<compile_context>
chip_gen: v7x
topology: tpu7x:2x2x1
jax: 0.10.0
libtpu: 0.0.40
codegen_flags: <defaults>
</compile_context>

<pallas_src>
import math

import jax
import jax.numpy as jnp
from jax.experimental import pallas as pl
from jax.experimental.pallas import tpu as pltpu


# -----------------------------------------------------------------------------
# fused kernel: one encoder layer per grid step (+ embedding LN on step 0,
# pooler/classifier/softmax tail on the last step)
# -----------------------------------------------------------------------------
def _bert_kernel(hidden_ref, bias_ref, embg_ref, embb_ref,
                 qw_ref, qb_ref, kw_ref, kb_ref, vw_ref, vb_ref,
                 ow_ref, ob_ref, ln1g_ref, ln1b_ref,
                 iw_ref, ib_ref, fw_ref, fb_ref, ln2g_ref, ln2b_ref,
                 poolw_ref, poolb_ref, clsw_ref, clsb_ref,
                 probs_ref, h_ref, *, ln_eps=1e-12):
    f32, bf16 = jnp.float32, jnp.bfloat16
    tB, S, H = hidden_ref.shape          # batch tile, seq, hidden
    nH, _, D = qw_ref.shape              # heads, (hidden), head dim
    M = tB * S
    l = pl.program_id(1)                 # encoder layer index (grid axis 1)

    def layernorm(x, g, b):
        mean = jnp.mean(x, axis=-1, keepdims=True)
        var = jnp.mean(jnp.square(x - mean), axis=-1, keepdims=True)
        return (x - mean) * jax.lax.rsqrt(var + ln_eps) * g + b

    # ---- first layer step of each batch tile: embedding LayerNorm into the
    #      carried VMEM activation buffer --------------------------------------
    @pl.when(l == 0)
    def _():
        h_ref[...] = layernorm(hidden_ref[...].reshape(M, H).astype(f32),
                               embg_ref[...], embb_ref[...])

    x = h_ref[...]                        # (M, H) f32
    xb = x.astype(bf16)
    neg_bias = bias_ref[...]              # (tB, 1, S) additive padding-mask bias

    # ---- self-attention ------------------------------------------------------
    # Head split comes from the leading axis of the per-head weights, so there
    # are no lane-dim slices of activations and no concatenations.  Scores and
    # context are B-batched dot_generals; the output projection is accumulated
    # per head straight into an f32 accumulator (MXU result path).
    attn = jnp.zeros((M, H), f32)
    for n in range(nH):                   # static unroll over heads
        qn = jnp.dot(xb, qw_ref[n], preferred_element_type=f32) + qb_ref[n]  # (M, D)
        kn = jnp.dot(xb, kw_ref[n], preferred_element_type=f32) + kb_ref[n]
        vn = jnp.dot(xb, vw_ref[n], preferred_element_type=f32) + vb_ref[n]
        q3 = qn.reshape(tB, S, D).astype(bf16)    # 1/sqrt(D) pre-folded into q_w/q_b
        k3 = kn.reshape(tB, S, D).astype(bf16)
        v3 = vn.reshape(tB, S, D).astype(bf16)
        s = jnp.einsum('bsd,btd->bst', q3, k3,
                       preferred_element_type=f32)            # (tB, S, S)
        s = s + neg_bias                                      # padding mask, f32
        m = jnp.max(s, axis=-1, keepdims=True)
        p = jnp.exp(s - m)
        p = p / jnp.sum(p, axis=-1, keepdims=True)            # exact softmax
        ctx = jnp.einsum('bst,btd->bsd', p.astype(bf16), v3,
                         preferred_element_type=f32)          # (tB, S, D)
        attn = attn + jnp.dot(ctx.reshape(M, D).astype(bf16), ow_ref[n],
                              preferred_element_type=f32)     # (M, H) per-head acc
    attn = attn + ob_ref[...]
    x = layernorm(attn + x, ln1g_ref[...], ln1b_ref[...])

    # ---- feed-forward ----------------------------------------------------------
    ffn = jnp.dot(x.astype(bf16), iw_ref[...],
                  preferred_element_type=f32) + ib_ref[...]
    # TODO(synk): reference BertIntermediate uses exact (erf) GELU; tanh
    # approximation keeps the Mosaic lowering clean (~1e-3 drift).
    ffn = jax.nn.gelu(ffn, approximate=True)
    ffn = jnp.dot(ffn.astype(bf16), fw_ref[...],
                  preferred_element_type=f32) + fb_ref[...]
    x = layernorm(ffn + x, ln2g_ref[...], ln2b_ref[...])
    h_ref[...] = x                        # carry to next layer / next grid step

    # ---- last layer: pooler (tanh on [CLS]) + classifier + softmax tail --------
    @pl.when(l == pl.num_programs(1) - 1)
    def _():
        cls_rows = x.reshape(tB, S, H)[:, 0, :]               # strided [CLS] pick
        pooled = jnp.tanh(
            jnp.dot(cls_rows.astype(bf16), poolw_ref[...],
                    preferred_element_type=f32) + poolb_ref[...])
        # dropout(p=0.1) is identity at inference time
        logits = jnp.dot(pooled.astype(bf16), clsw_ref[...],
                         preferred_element_type=f32) + clsb_ref[...]
        mx = jnp.max(logits, axis=-1, keepdims=True)
        e = jnp.exp(logits - mx)
        probs = e / jnp.sum(e, axis=-1, keepdims=True)
        probs_ref[...] = probs.reshape(tB, 1, -1).astype(probs_ref.dtype)


# -----------------------------------------------------------------------------
# parameters (deterministic synthetic init; shapes follow a tiny BertModel)
# -----------------------------------------------------------------------------
def init_params(key, vocab=128, max_pos=64, type_vocab=2, hidden=32, heads=2,
                intermediate=64, num_layers=2, num_labels=3):
    keys = iter(jax.random.split(key, 16))

    def w(shape, scale=0.02):
        return scale * jax.random.normal(next(keys), shape, jnp.float32)

    L, H, nH, I = num_layers, hidden, heads, intermediate
    D = H // nH
    q_scale = 1.0 / math.sqrt(D)

    params = {
        "config": dict(vocab=vocab, max_pos=max_pos, hidden=hidden, heads=heads,
                       intermediate=intermediate, num_layers=num_layers,
                       num_labels=num_labels),
        "embeddings": {
            "word": w((vocab, H)),
            "position": w((max_pos, H)),
            "token_type": w((type_vocab, H)),
            "ln_g": jnp.ones((1, H), jnp.float32),
            "ln_b": jnp.zeros((1, H), jnp.float32),
        },
        # Per-layer weights stacked on a leading L axis for grid streaming.
        # Q/K/V weights are stored per-head (L, nH, H, D) (a torch (H, H)
        # Linear maps via W.T.reshape(H, nH, D).transpose(1, 0, 2)); the output
        # projection is stored (L, nH, D, H).  1/sqrt(D) is folded into Q.
        # TODO(synk): on v7x, i_w/f_w could be stored fp8 to halve HBM traffic.
        "enc": {
            "q_w": (q_scale * w((L, nH, H, D))).astype(jnp.bfloat16),
            "q_b": jnp.zeros((L, nH, 1, D), jnp.float32),   # pre-scaled (zeros)
            "k_w": w((L, nH, H, D)).astype(jnp.bfloat16),
            "k_b": jnp.zeros((L, nH, 1, D), jnp.float32),
            "v_w": w((L, nH, H, D)).astype(jnp.bfloat16),
            "v_b": jnp.zeros((L, nH, 1, D), jnp.float32),
            "o_w": w((L, nH, D, H)).astype(jnp.bfloat16),
            "o_b": jnp.zeros((L, 1, H), jnp.float32),
            "ln1_g": jnp.ones((L, 1, H), jnp.float32),
            "ln1_b": jnp.zeros((L, 1, H), jnp.float32),
            "i_w": w((L, H, I)).astype(jnp.bfloat16),
            "i_b": jnp.zeros((L, 1, I), jnp.float32),
            "f_w": w((L, I, H)).astype(jnp.bfloat16),
            "f_b": jnp.zeros((L, 1, H), jnp.float32),
            "ln2_g": jnp.ones((L, 1, H), jnp.float32),
            "ln2_b": jnp.zeros((L, 1, H), jnp.float32),
        },
        "pooler_w": w((H, H)).astype(jnp.bfloat16),
        "pooler_b": jnp.zeros((1, H), jnp.float32),
        "cls_w": w((H, num_labels)).astype(jnp.bfloat16),
        "cls_b": jnp.zeros((1, num_labels), jnp.float32),
    }
    return params


# -----------------------------------------------------------------------------
# forward pass  (== CustomBertClassifier.forward, inference mode)
# -----------------------------------------------------------------------------
def bert_classifier_forward(params, input_ids, attention_mask, *, batch_tile=None):
    cfg = params["config"]
    B, S = input_ids.shape
    H, nH, L = cfg["hidden"], cfg["heads"], cfg["num_layers"]
    NL = cfg["num_labels"]
    tB = B if batch_tile is None else batch_tile
    assert B % tB == 0

    # ---- embeddings (table gathers are plain-JAX glue) -------------------------
    emb = params["embeddings"]
    word = jnp.take(emb["word"], input_ids, axis=0)              # (B, S, H)
    pos = emb["position"][:S][None, :, :]                        # (1, S, H)
    tok = emb["token_type"][0][None, None, :]                    # token_type_ids == 0
    hidden0 = (word + pos + tok).astype(jnp.float32)             # (B, S, H)

    # additive padding-mask bias, precomputed once
    neg_bias = (1.0 - attention_mask.astype(jnp.float32))[:, None, :] \
        * jnp.float32(-1e9)                                      # (B, 1, S)

    enc = params["enc"]
    inputs = (hidden0, neg_bias, emb["ln_g"], emb["ln_b"],
              enc["q_w"], enc["q_b"], enc["k_w"], enc["k_b"],
              enc["v_w"], enc["v_b"], enc["o_w"], enc["o_b"],
              enc["ln1_g"], enc["ln1_b"], enc["i_w"], enc["i_b"],
              enc["f_w"], enc["f_b"], enc["ln2_g"], enc["ln2_b"],
              params["pooler_w"], params["pooler_b"],
              params["cls_w"], params["cls_b"])

    def batch_spec(shape):     # tiled on the leading batch axis
        return pl.BlockSpec((tB,) + shape[1:],
                            lambda bt, l: (bt,) + (0,) * (len(shape) - 1))

    def layer_spec(shape):     # streamed per encoder layer (leading L squeezed)
        return pl.BlockSpec((None,) + shape[1:],
                            lambda bt, l: (l,) + (0,) * (len(shape) - 1))

    def const_spec(shape):     # fetched once, resident for the whole grid
        return pl.BlockSpec(shape, lambda bt, l: (0,) * len(shape))

    in_specs = [batch_spec(hidden0.shape), batch_spec(neg_bias.shape),
                const_spec(emb["ln_g"].shape), const_spec(emb["ln_b"].shape)]
    for name in ("q_w", "q_b", "k_w", "k_b", "v_w", "v_b", "o_w", "o_b",
                 "ln1_g", "ln1_b", "i_w", "i_b", "f_w", "f_b",
                 "ln2_g", "ln2_b"):
        in_specs.append(layer_spec(enc[name].shape))
    in_specs += [const_spec(params["pooler_w"].shape),
                 const_spec(params["pooler_b"].shape),
                 const_spec(params["cls_w"].shape),
                 const_spec(params["cls_b"].shape)]

    out = pl.pallas_call(
        _bert_kernel,
        grid=(B // tB, L),
        in_specs=in_specs,
        out_specs=pl.BlockSpec((tB, 1, NL), lambda bt, l: (bt, 0, 0)),
        out_shape=jax.ShapeDtypeStruct((B, 1, NL), jnp.float32),
        scratch_shapes=[pltpu.VMEM((tB * S, H), jnp.float32)],   # carried activations
        compiler_params=pltpu.CompilerParams(
            # batch tiles can split across v7x's two TensorCores; the layer axis
            # carries the activation scratch and streams one layer of weights
            # per step (double-buffered by the Pallas pipeline).
            dimension_semantics=("parallel", "arbitrary"),
            # TODO(synk): at real KoBERT scale tune per generation
            # (~100 MiB on v5e/v6e; keep <=48 MiB on v7x's 64 MiB VMEM).
            vmem_limit_bytes=48 * 1024 * 1024),
    )(*inputs)
    return out[:, 0, :]


# -----------------------------------------------------------------------------
# main
# -----------------------------------------------------------------------------
if __name__ == "__main__":
    key = jax.random.PRNGKey(0)
    pkey, ikey = jax.random.split(key)

    params = init_params(pkey)
    B, S = 2, 8
    input_ids = jax.random.randint(ikey, (B, S), 0,
                                   params["config"]["vocab"], dtype=jnp.int32)
    attention_mask = jnp.ones((B, S), dtype=jnp.int32).at[1, 6:].set(0)

    probs = bert_classifier_forward(params, input_ids, attention_mask,
                                    batch_tile=1)
    probs = jax.block_until_ready(probs)

    assert probs.shape == (B, params["config"]["num_labels"])
    assert bool(jnp.all(jnp.isfinite(probs)))
    assert bool(jnp.allclose(jnp.sum(probs, axis=1), 1.0, atol=1e-5))
    print("KERNEL_OK")
</pallas_src>

<mosaic_0001>
module attributes {stable_mosaic.version = 11 : i64} {
  func.func @_bert_kernel(%arg0: i32, %arg1: i32, %arg2: memref<1x8x32xf32, #tpu.memory_space<vmem>>, %arg3: memref<1x1x8xf32, #tpu.memory_space<vmem>>, %arg4: memref<1x32xf32, #tpu.memory_space<vmem>>, %arg5: memref<1x32xf32, #tpu.memory_space<vmem>>, %arg6: memref<1x2x32x16xbf16, #tpu.memory_space<vmem>>, %arg7: memref<1x2x1x16xf32, #tpu.memory_space<vmem>>, %arg8: memref<1x2x32x16xbf16, #tpu.memory_space<vmem>>, %arg9: memref<1x2x1x16xf32, #tpu.memory_space<vmem>>, %arg10: memref<1x2x32x16xbf16, #tpu.memory_space<vmem>>, %arg11: memref<1x2x1x16xf32, #tpu.memory_space<vmem>>, %arg12: memref<1x2x16x32xbf16, #tpu.memory_space<vmem>>, %arg13: memref<1x1x32xf32, #tpu.memory_space<vmem>>, %arg14: memref<1x1x32xf32, #tpu.memory_space<vmem>>, %arg15: memref<1x1x32xf32, #tpu.memory_space<vmem>>, %arg16: memref<1x32x64xbf16, #tpu.memory_space<vmem>>, %arg17: memref<1x1x64xf32, #tpu.memory_space<vmem>>, %arg18: memref<1x64x32xbf16, #tpu.memory_space<vmem>>, %arg19: memref<1x1x32xf32, #tpu.memory_space<vmem>>, %arg20: memref<1x1x32xf32, #tpu.memory_space<vmem>>, %arg21: memref<1x1x32xf32, #tpu.memory_space<vmem>>, %arg22: memref<32x32xbf16, #tpu.memory_space<vmem>>, %arg23: memref<1x32xf32, #tpu.memory_space<vmem>>, %arg24: memref<32x3xbf16, #tpu.memory_space<vmem>>, %arg25: memref<1x3xf32, #tpu.memory_space<vmem>>, %arg26: memref<1x1x3xf32, #tpu.memory_space<vmem>>, %arg27: memref<8x32xf32, #tpu.memory_space<vmem>>) attributes {dimension_semantics = [#tpu.dimension_semantics<parallel>, #tpu.dimension_semantics<arbitrary>], iteration_bounds = array<i64: 2, 2>, scalar_prefetch = 0 : i64, scratch_operands = 1 : i64, tpu.core_type = #tpu.core_type<tc>, window_params = [{transform_indices = @transform_0, window_bounds = array<i64: 1, 8, 32>}, {transform_indices = @transform_1, window_bounds = array<i64: 1, 1, 8>}, {pipeline_mode = #tpu.pipeline_mode<synchronous>, transform_indices = @transform_2, window_bounds = array<i64: 1, 32>}, {pipeline_mode = #tpu.pipeline_mode<synchronous>, transform_indices = @transform_3, window_bounds = array<i64: 1, 32>}, {transform_indices = @transform_4, window_bounds = array<i64: 1, 2, 32, 16>}, {transform_indices = @transform_5, window_bounds = array<i64: 1, 2, 1, 16>}, {transform_indices = @transform_6, window_bounds = array<i64: 1, 2, 32, 16>}, {transform_indices = @transform_7, window_bounds = array<i64: 1, 2, 1, 16>}, {transform_indices = @transform_8, window_bounds = array<i64: 1, 2, 32, 16>}, {transform_indices = @transform_9, window_bounds = array<i64: 1, 2, 1, 16>}, {transform_indices = @transform_10, window_bounds = array<i64: 1, 2, 16, 32>}, {transform_indices = @transform_11, window_bounds = array<i64: 1, 1, 32>}, {transform_indices = @transform_12, window_bounds = array<i64: 1, 1, 32>}, {transform_indices = @transform_13, window_bounds = array<i64: 1, 1, 32>}, {transform_indices = @transform_14, window_bounds = array<i64: 1, 32, 64>}, {transform_indices = @transform_15, window_bounds = array<i64: 1, 1, 64>}, {transform_indices = @transform_16, window_bounds = array<i64: 1, 64, 32>}, {transform_indices = @transform_17, window_bounds = array<i64: 1, 1, 32>}, {transform_indices = @transform_18, window_bounds = array<i64: 1, 1, 32>}, {transform_indices = @transform_19, window_bounds = array<i64: 1, 1, 32>}, {pipeline_mode = #tpu.pipeline_mode<synchronous>, transform_indices = @transform_20, window_bounds = array<i64: 32, 32>}, {pipeline_mode = #tpu.pipeline_mode<synchronous>, transform_indices = @transform_21, window_bounds = array<i64: 1, 32>}, {pipeline_mode = #tpu.pipeline_mode<synchronous>, transform_indices = @transform_22, window_bounds = array<i64: 32, 3>}, {pipeline_mode = #tpu.pipeline_mode<synchronous>, transform_indices = @transform_23, window_bounds = array<i64: 1, 3>}, {transform_indices = @transform_24, window_bounds = array<i64: 1, 1, 3>}]} {
    %c0_i32 = arith.constant 0 : i32
    %0 = arith.cmpi eq, %arg1, %c0_i32 : i32
    %1 = arith.extui %0 : i1 to i32
    %c0_i32_0 = arith.constant 0 : i32
    %2 = arith.cmpi ne, %1, %c0_i32_0 : i32
    scf.if %2 {
      %c0_122 = arith.constant 0 : index
      %c0_123 = arith.constant 0 : index
      %c0_124 = arith.constant 0 : index
      %192 = vector.load %arg2[%c0_122, %c0_123, %c0_124] : memref<1x8x32xf32, #tpu.memory_space<vmem>>, vector<1x8x32xf32>
      %193 = vector.shape_cast %192 : vector<1x8x32xf32> to vector<8x32xf32>
      %c0_125 = arith.constant 0 : index
      %c0_126 = arith.constant 0 : index
      %194 = vector.load %arg4[%c0_125, %c0_126] : memref<1x32xf32, #tpu.memory_space<vmem>>, vector<1x32xf32>
      %c0_127 = arith.constant 0 : index
      %c0_128 = arith.constant 0 : index
      %195 = vector.load %arg5[%c0_127, %c0_128] : memref<1x32xf32, #tpu.memory_space<vmem>>, vector<1x32xf32>
      %cst_129 = arith.constant dense<0.000000e+00> : vector<8xf32>
      %196 = vector.multi_reduction <add>, %193, %cst_129 [1] : vector<8x32xf32> to vector<8xf32>
      %197 = vector.shape_cast %196 : vector<8xf32> to vector<8x1xf32>
      %cst_130 = arith.constant 3.200000e+01 : f32
      %198 = vector.broadcast %cst_130 : f32 to vector<8x1xf32>
      %199 = arith.divf %197, %198 : vector<8x1xf32>
      %200 = vector.broadcast %199 : vector<8x1xf32> to vector<8x32xf32>
      %201 = arith.subf %193, %200 : vector<8x32xf32>
      %202 = arith.mulf %201, %201 : vector<8x32xf32>
      %cst_131 = arith.constant dense<0.000000e+00> : vector<8xf32>
      %203 = vector.multi_reduction <add>, %202, %cst_131 [1] : vector<8x32xf32> to vector<8xf32>
      %204 = vector.shape_cast %203 : vector<8xf32> to vector<8x1xf32>
      %cst_132 = arith.constant 3.200000e+01 : f32
      %205 = vector.broadcast %cst_132 : f32 to vector<8x1xf32>
      %206 = arith.divf %204, %205 : vector<8x1xf32>
      %207 = vector.broadcast %199 : vector<8x1xf32> to vector<8x32xf32>
      %208 = arith.subf %193, %207 : vector<8x32xf32>
      %cst_133 = arith.constant 9.99999996E-13 : f32
      %209 = vector.broadcast %cst_133 : f32 to vector<8x1xf32>
      %210 = arith.addf %206, %209 : vector<8x1xf32>
      %211 = math.rsqrt %210 : vector<8x1xf32>
      %212 = vector.broadcast %211 : vector<8x1xf32> to vector<8x32xf32>
      %213 = arith.mulf %208, %212 : vector<8x32xf32>
      %214 = vector.broadcast %194 : vector<1x32xf32> to vector<8x32xf32>
      %215 = arith.mulf %213, %214 : vector<8x32xf32>
      %216 = vector.broadcast %195 : vector<1x32xf32> to vector<8x32xf32>
      %217 = arith.addf %215, %216 : vector<8x32xf32>
      %c0_134 = arith.constant 0 : index
      %c0_135 = arith.constant 0 : index
      %218 = vector.load %arg27[%c0_134, %c0_135] : memref<8x32xf32, #tpu.memory_space<vmem>>, vector<8x32xf32>
      tpu.vector_store %arg27[%c0_134, %c0_135], %217 {strides = array<i32>} : memref<8x32xf32, #tpu.memory_space<vmem>>, vector<8x32xf32>,
    } else {
    }
    %c0 = arith.constant 0 : index
    %c0_1 = arith.constant 0 : index
    %3 = vector.load %arg27[%c0, %c0_1] : memref<8x32xf32, #tpu.memory_space<vmem>>, vector<8x32xf32>
    %4 = arith.truncf %3 : vector<8x32xf32> to vector<8x32xbf16>
    %c0_2 = arith.constant 0 : index
    %c0_3 = arith.constant 0 : index
    %c0_4 = arith.constant 0 : index
    %5 = vector.load %arg3[%c0_2, %c0_3, %c0_4] : memref<1x1x8xf32, #tpu.memory_space<vmem>>, vector<1x1x8xf32>
    %cst = arith.constant 0.000000e+00 : f32
    %6 = vector.broadcast %cst : f32 to vector<8x32xf32>
    %c0_5 = arith.constant 0 : index
    %c0_6 = arith.constant 0 : index
    %c0_7 = arith.constant 0 : index
    %c0_8 = arith.constant 0 : index
    %7 = vector.load %arg6[%c0_5, %c0_6, %c0_7, %c0_8] : memref<1x2x32x16xbf16, #tpu.memory_space<vmem>>, vector<1x1x32x16xbf16>
    %8 = vector.shape_cast %7 : vector<1x1x32x16xbf16> to vector<32x16xbf16>
    %cst_9 = arith.constant dense<0.000000e+00> : vector<8x16xf32>
    %9 = tpu.matmul %4, %8, %cst_9 {dimension_numbers = #tpu.dot_dimension_numbers<[1], [0], [0], [1], [0, 0, 1, 1], [], []>} : vector<8x32xbf16>, vector<32x16xbf16>, vector<8x16xf32> -> vector<8x16xf32>
    %c0_10 = arith.constant 0 : index
    %c0_11 = arith.constant 0 : index
    %c0_12 = arith.constant 0 : index
    %c0_13 = arith.constant 0 : index
    %10 = vector.load %arg7[%c0_10, %c0_11, %c0_12, %c0_13] : memref<1x2x1x16xf32, #tpu.memory_space<vmem>>, vector<1x1x1x16xf32>
    %11 = vector.shape_cast %10 : vector<1x1x1x16xf32> to vector<1x16xf32>
    %12 = vector.broadcast %11 : vector<1x16xf32> to vector<8x16xf32>
    %13 = arith.addf %9, %12 : vector<8x16xf32>
    %c0_14 = arith.constant 0 : index
    %c0_15 = arith.constant 0 : index
    %c0_16 = arith.constant 0 : index
    %c0_17 = arith.constant 0 : index
    %14 = vector.load %arg8[%c0_14, %c0_15, %c0_16, %c0_17] : memref<1x2x32x16xbf16, #tpu.memory_space<vmem>>, vector<1x1x32x16xbf16>
    %15 = vector.shape_cast %14 : vector<1x1x32x16xbf16> to vector<32x16xbf16>
    %cst_18 = arith.constant dense<0.000000e+00> : vector<8x16xf32>
    %16 = tpu.matmul %4, %15, %cst_18 {dimension_numbers = #tpu.dot_dimension_numbers<[1], [0], [0], [1], [0, 0, 1, 1], [], []>} : vector<8x32xbf16>, vector<32x16xbf16>, vector<8x16xf32> -> vector<8x16xf32>
    %c0_19 = arith.constant 0 : index
    %c0_20 = arith.constant 0 : index
    %c0_21 = arith.constant 0 : index
    %c0_22 = arith.constant 0 : index
    %17 = vector.load %arg9[%c0_19, %c0_20, %c0_21, %c0_22] : memref<1x2x1x16xf32, #tpu.memory_space<vmem>>, vector<1x1x1x16xf32>
    %18 = vector.shape_cast %17 : vector<1x1x1x16xf32> to vector<1x16xf32>
    %19 = vector.broadcast %18 : vector<1x16xf32> to vector<8x16xf32>
    %20 = arith.addf %16, %19 : vector<8x16xf32>
    %c0_23 = arith.constant 0 : index
    %c0_24 = arith.constant 0 : index
    %c0_25 = arith.constant 0 : index
    %c0_26 = arith.constant 0 : index
    %21 = vector.load %arg10[%c0_23, %c0_24, %c0_25, %c0_26] : memref<1x2x32x16xbf16, #tpu.memory_space<vmem>>, vector<1x1x32x16xbf16>
    %22 = vector.shape_cast %21 : vector<1x1x32x16xbf16> to vector<32x16xbf16>
    %cst_27 = arith.constant dense<0.000000e+00> : vector<8x16xf32>
    %23 = tpu.matmul %4, %22, %cst_27 {dimension_numbers = #tpu.dot_dimension_numbers<[1], [0], [0], [1], [0, 0, 1, 1], [], []>} : vector<8x32xbf16>, vector<32x16xbf16>, vector<8x16xf32> -> vector<8x16xf32>
    %c0_28 = arith.constant 0 : index
    %c0_29 = arith.constant 0 : index
    %c0_30 = arith.constant 0 : index
    %c0_31 = arith.constant 0 : index
    %24 = vector.load %arg11[%c0_28, %c0_29, %c0_30, %c0_31] : memref<1x2x1x16xf32, #tpu.memory_space<vmem>>, vector<1x1x1x16xf32>
    %25 = vector.shape_cast %24 : vector<1x1x1x16xf32> to vector<1x16xf32>
    %26 = vector.broadcast %25 : vector<1x16xf32> to vector<8x16xf32>
    %27 = arith.addf %23, %26 : vector<8x16xf32>
    %28 = vector.shape_cast %13 : vector<8x16xf32> to vector<1x8x16xf32>
    %29 = arith.truncf %28 : vector<1x8x16xf32> to vector<1x8x16xbf16>
    %30 = vector.shape_cast %20 : vector<8x16xf32> to vector<1x8x16xf32>
    %31 = arith.truncf %30 : vector<1x8x16xf32> to vector<1x8x16xbf16>
    %32 = vector.shape_cast %27 : vector<8x16xf32> to vector<1x8x16xf32>
    %33 = arith.truncf %32 : vector<1x8x16xf32> to vector<1x8x16xbf16>
    "tpu.trace_start"() <{level = 10 : i32, message = "bsd,btd->bst"}> : () -> ()
    %cst_32 = arith.constant dense<0.000000e+00> : vector<1x8x8xf32>
    %34 = tpu.matmul %29, %31, %cst_32 {dimension_numbers = #tpu.dot_dimension_numbers<[2], [2], [1], [1], [0, 0, 0, 1, 1, 1], [0], [0]>} : vector<1x8x16xbf16>, vector<1x8x16xbf16>, vector<1x8x8xf32> -> vector<1x8x8xf32>
    "tpu.trace_stop"() : () -> ()
    %35 = vector.broadcast %5 : vector<1x1x8xf32> to vector<1x8x8xf32>
    %36 = arith.addf %34, %35 : vector<1x8x8xf32>
    %cst_33 = arith.constant dense<0xFF800000> : vector<1x8xf32>
    %37 = vector.multi_reduction <maximumf>, %36, %cst_33 [2] : vector<1x8x8xf32> to vector<1x8xf32>
    %38 = vector.shape_cast %37 : vector<1x8xf32> to vector<1x8x1xf32>
    %39 = vector.broadcast %38 : vector<1x8x1xf32> to vector<1x8x8xf32>
    %40 = arith.subf %36, %39 : vector<1x8x8xf32>
    %41 = math.exp %40 : vector<1x8x8xf32>
    %cst_34 = arith.constant dense<0.000000e+00> : vector<1x8xf32>
    %42 = vector.multi_reduction <add>, %41, %cst_34 [2] : vector<1x8x8xf32> to vector<1x8xf32>
    %43 = vector.shape_cast %42 : vector<1x8xf32> to vector<1x8x1xf32>
    %44 = vector.broadcast %43 : vector<1x8x1xf32> to vector<1x8x8xf32>
    %45 = arith.divf %41, %44 : vector<1x8x8xf32>
    %46 = arith.truncf %45 : vector<1x8x8xf32> to vector<1x8x8xbf16>
    "tpu.trace_start"() <{level = 10 : i32, message = "bst,btd->bsd"}> : () -> ()
    %cst_35 = arith.constant dense<0.000000e+00> : vector<1x8x16xf32>
    %47 = tpu.matmul %46, %33, %cst_35 {dimension_numbers = #tpu.dot_dimension_numbers<[2], [1], [1], [2], [0, 0, 0, 1, 1, 2], [0], [0]>} : vector<1x8x8xbf16>, vector<1x8x16xbf16>, vector<1x8x16xf32> -> vector<1x8x16xf32>
    "tpu.trace_stop"() : () -> ()
    %48 = vector.shape_cast %47 : vector<1x8x16xf32> to vector<8x16xf32>
    %49 = arith.truncf %48 : vector<8x16xf32> to vector<8x16xbf16>
    %c0_36 = arith.constant 0 : index
    %c0_37 = arith.constant 0 : index
    %c0_38 = arith.constant 0 : index
    %c0_39 = arith.constant 0 : index
    %50 = vector.load %arg12[%c0_36, %c0_37, %c0_38, %c0_39] : memref<1x2x16x32xbf16, #tpu.memory_space<vmem>>, vector<1x1x16x32xbf16>
    %51 = vector.shape_cast %50 : vector<1x1x16x32xbf16> to vector<16x32xbf16>
    %cst_40 = arith.constant dense<0.000000e+00> : vector<8x32xf32>
    %52 = tpu.matmul %49, %51, %cst_40 {dimension_numbers = #tpu.dot_dimension_numbers<[1], [0], [0], [1], [0, 0, 1, 1], [], []>} : vector<8x16xbf16>, vector<16x32xbf16>, vector<8x32xf32> -> vector<8x32xf32>
    %53 = arith.addf %6, %52 : vector<8x32xf32>
    %c0_41 = arith.constant 0 : index
    %c1 = arith.constant 1 : index
    %c0_42 = arith.constant 0 : index
    %c0_43 = arith.constant 0 : index
    %54 = vector.load %arg6[%c0_41, %c1, %c0_42, %c0_43] : memref<1x2x32x16xbf16, #tpu.memory_space<vmem>>, vector<1x1x32x16xbf16>
    %55 = vector.shape_cast %54 : vector<1x1x32x16xbf16> to vector<32x16xbf16>
    %cst_44 = arith.constant dense<0.000000e+00> : vector<8x16xf32>
    %56 = tpu.matmul %4, %55, %cst_44 {dimension_numbers = #tpu.dot_dimension_numbers<[1], [0], [0], [1], [0, 0, 1, 1], [], []>} : vector<8x32xbf16>, vector<32x16xbf16>, vector<8x16xf32> -> vector<8x16xf32>
    %c0_45 = arith.constant 0 : index
    %c1_46 = arith.constant 1 : index
    %c0_47 = arith.constant 0 : index
    %c0_48 = arith.constant 0 : index
    %57 = vector.load %arg7[%c0_45, %c1_46, %c0_47, %c0_48] : memref<1x2x1x16xf32, #tpu.memory_space<vmem>>, vector<1x1x1x16xf32>
    %58 = vector.shape_cast %57 : vector<1x1x1x16xf32> to vector<1x16xf32>
    %59 = vector.broadcast %58 : vector<1x16xf32> to vector<8x16xf32>
    %60 = arith.addf %56, %59 : vector<8x16xf32>
    %c0_49 = arith.constant 0 : index
    %c1_50 = arith.constant 1 : index
    %c0_51 = arith.constant 0 : index
    %c0_52 = arith.constant 0 : index
    %61 = vector.load %arg8[%c0_49, %c1_50, %c0_51, %c0_52] : memref<1x2x32x16xbf16, #tpu.memory_space<vmem>>, vector<1x1x32x16xbf16>
    %62 = vector.shape_cast %61 : vector<1x1x32x16xbf16> to vector<32x16xbf16>
    %cst_53 = arith.constant dense<0.000000e+00> : vector<8x16xf32>
    %63 = tpu.matmul %4, %62, %cst_53 {dimension_numbers = #tpu.dot_dimension_numbers<[1], [0], [0], [1], [0, 0, 1, 1], [], []>} : vector<8x32xbf16>, vector<32x16xbf16>, vector<8x16xf32> -> vector<8x16xf32>
    %c0_54 = arith.constant 0 : index
    %c1_55 = arith.constant 1 : index
    %c0_56 = arith.constant 0 : index
    %c0_57 = arith.constant 0 : index
    %64 = vector.load %arg9[%c0_54, %c1_55, %c0_56, %c0_57] : memref<1x2x1x16xf32, #tpu.memory_space<vmem>>, vector<1x1x1x16xf32>
    %65 = vector.shape_cast %64 : vector<1x1x1x16xf32> to vector<1x16xf32>
    %66 = vector.broadcast %65 : vector<1x16xf32> to vector<8x16xf32>
    %67 = arith.addf %63, %66 : vector<8x16xf32>
    %c0_58 = arith.constant 0 : index
    %c1_59 = arith.constant 1 : index
    %c0_60 = arith.constant 0 : index
    %c0_61 = arith.constant 0 : index
    %68 = vector.load %arg10[%c0_58, %c1_59, %c0_60, %c0_61] : memref<1x2x32x16xbf16, #tpu.memory_space<vmem>>, vector<1x1x32x16xbf16>
    %69 = vector.shape_cast %68 : vector<1x1x32x16xbf16> to vector<32x16xbf16>
    %cst_62 = arith.constant dense<0.000000e+00> : vector<8x16xf32>
    %70 = tpu.matmul %4, %69, %cst_62 {dimension_numbers = #tpu.dot_dimension_numbers<[1], [0], [0], [1], [0, 0, 1, 1], [], []>} : vector<8x32xbf16>, vector<32x16xbf16>, vector<8x16xf32> -> vector<8x16xf32>
    %c0_63 = arith.constant 0 : index
    %c1_64 = arith.constant 1 : index
    %c0_65 = arith.constant 0 : index
    %c0_66 = arith.constant 0 : index
    %71 = vector.load %arg11[%c0_63, %c1_64, %c0_65, %c0_66] : memref<1x2x1x16xf32, #tpu.memory_space<vmem>>, vector<1x1x1x16xf32>
    %72 = vector.shape_cast %71 : vector<1x1x1x16xf32> to vector<1x16xf32>
    %73 = vector.broadcast %72 : vector<1x16xf32> to vector<8x16xf32>
    %74 = arith.addf %70, %73 : vector<8x16xf32>
    %75 = vector.shape_cast %60 : vector<8x16xf32> to vector<1x8x16xf32>
    %76 = arith.truncf %75 : vector<1x8x16xf32> to vector<1x8x16xbf16>
    %77 = vector.shape_cast %67 : vector<8x16xf32> to vector<1x8x16xf32>
    %78 = arith.truncf %77 : vector<1x8x16xf32> to vector<1x8x16xbf16>
    %79 = vector.shape_cast %74 : vector<8x16xf32> to vector<1x8x16xf32>
    %80 = arith.truncf %79 : vector<1x8x16xf32> to vector<1x8x16xbf16>
    "tpu.trace_start"() <{level = 10 : i32, message = "bsd,btd->bst"}> : () -> ()
    %cst_67 = arith.constant dense<0.000000e+00> : vector<1x8x8xf32>
    %81 = tpu.matmul %76, %78, %cst_67 {dimension_numbers = #tpu.dot_dimension_numbers<[2], [2], [1], [1], [0, 0, 0, 1, 1, 1], [0], [0]>} : vector<1x8x16xbf16>, vector<1x8x16xbf16>, vector<1x8x8xf32> -> vector<1x8x8xf32>
    "tpu.trace_stop"() : () -> ()
    %82 = vector.broadcast %5 : vector<1x1x8xf32> to vector<1x8x8xf32>
    %83 = arith.addf %81, %82 : vector<1x8x8xf32>
    %cst_68 = arith.constant dense<0xFF800000> : vector<1x8xf32>
    %84 = vector.multi_reduction <maximumf>, %83, %cst_68 [2] : vector<1x8x8xf32> to vector<1x8xf32>
    %85 = vector.shape_cast %84 : vector<1x8xf32> to vector<1x8x1xf32>
    %86 = vector.broadcast %85 : vector<1x8x1xf32> to vector<1x8x8xf32>
    %87 = arith.subf %83, %86 : vector<1x8x8xf32>
    %88 = math.exp %87 : vector<1x8x8xf32>
    %cst_69 = arith.constant dense<0.000000e+00> : vector<1x8xf32>
    %89 = vector.multi_reduction <add>, %88, %cst_69 [2] : vector<1x8x8xf32> to vector<1x8xf32>
    %90 = vector.shape_cast %89 : vector<1x8xf32> to vector<1x8x1xf32>
    %91 = vector.broadcast %90 : vector<1x8x1xf32> to vector<1x8x8xf32>
    %92 = arith.divf %88, %91 : vector<1x8x8xf32>
    %93 = arith.truncf %92 : vector<1x8x8xf32> to vector<1x8x8xbf16>
    "tpu.trace_start"() <{level = 10 : i32, message = "bst,btd->bsd"}> : () -> ()
    %cst_70 = arith.constant dense<0.000000e+00> : vector<1x8x16xf32>
    %94 = tpu.matmul %93, %80, %cst_70 {dimension_numbers = #tpu.dot_dimension_numbers<[2], [1], [1], [2], [0, 0, 0, 1, 1, 2], [0], [0]>} : vector<1x8x8xbf16>, vector<1x8x16xbf16>, vector<1x8x16xf32> -> vector<1x8x16xf32>
    "tpu.trace_stop"() : () -> ()
    %95 = vector.shape_cast %94 : vector<1x8x16xf32> to vector<8x16xf32>
    %96 = arith.truncf %95 : vector<8x16xf32> to vector<8x16xbf16>
    %c0_71 = arith.constant 0 : index
    %c1_72 = arith.constant 1 : index
    %c0_73 = arith.constant 0 : index
    %c0_74 = arith.constant 0 : index
    %97 = vector.load %arg12[%c0_71, %c1_72, %c0_73, %c0_74] : memref<1x2x16x32xbf16, #tpu.memory_space<vmem>>, vector<1x1x16x32xbf16>
    %98 = vector.shape_cast %97 : vector<1x1x16x32xbf16> to vector<16x32xbf16>
    %cst_75 = arith.constant dense<0.000000e+00> : vector<8x32xf32>
    %99 = tpu.matmul %96, %98, %cst_75 {dimension_numbers = #tpu.dot_dimension_numbers<[1], [0], [0], [1], [0, 0, 1, 1], [], []>} : vector<8x16xbf16>, vector<16x32xbf16>, vector<8x32xf32> -> vector<8x32xf32>
    %100 = arith.addf %53, %99 : vector<8x32xf32>
    %c0_76 = arith.constant 0 : index
    %c0_77 = arith.constant 0 : index
    %c0_78 = arith.constant 0 : index
    %101 = vector.load %arg13[%c0_76, %c0_77, %c0_78] : memref<1x1x32xf32, #tpu.memory_space<vmem>>, vector<1x1x32xf32>
    %102 = vector.shape_cast %101 : vector<1x1x32xf32> to vector<1x32xf32>
    %103 = vector.broadcast %102 : vector<1x32xf32> to vector<8x32xf32>
    %104 = arith.addf %100, %103 : vector<8x32xf32>
    %105 = arith.addf %104, %3 : vector<8x32xf32>
    %c0_79 = arith.constant 0 : index
    %c0_80 = arith.constant 0 : index
    %c0_81 = arith.constant 0 : index
    %106 = vector.load %arg14[%c0_79, %c0_80, %c0_81] : memref<1x1x32xf32, #tpu.memory_space<vmem>>, vector<1x1x32xf32>
    %107 = vector.shape_cast %106 : vector<1x1x32xf32> to vector<1x32xf32>
    %c0_82 = arith.constant 0 : index
    %c0_83 = arith.constant 0 : index
    %c0_84 = arith.constant 0 : index
    %108 = vector.load %arg15[%c0_82, %c0_83, %c0_84] : memref<1x1x32xf32, #tpu.memory_space<vmem>>, vector<1x1x32xf32>
    %109 = vector.shape_cast %108 : vector<1x1x32xf32> to vector<1x32xf32>
    %cst_85 = arith.constant dense<0.000000e+00> : vector<8xf32>
    %110 = vector.multi_reduction <add>, %105, %cst_85 [1] : vector<8x32xf32> to vector<8xf32>
    %111 = vector.shape_cast %110 : vector<8xf32> to vector<8x1xf32>
    %cst_86 = arith.constant 3.200000e+01 : f32
    %112 = vector.broadcast %cst_86 : f32 to vector<8x1xf32>
    %113 = arith.divf %111, %112 : vector<8x1xf32>
    %114 = vector.broadcast %113 : vector<8x1xf32> to vector<8x32xf32>
    %115 = arith.subf %105, %114 : vector<8x32xf32>
    %116 = arith.mulf %115, %115 : vector<8x32xf32>
    %cst_87 = arith.constant dense<0.000000e+00> : vector<8xf32>
    %117 = vector.multi_reduction <add>, %116, %cst_87 [1] : vector<8x32xf32> to vector<8xf32>
    %118 = vector.shape_cast %117 : vector<8xf32> to vector<8x1xf32>
    %cst_88 = arith.constant 3.200000e+01 : f32
    %119 = vector.broadcast %cst_88 : f32 to vector<8x1xf32>
    %120 = arith.divf %118, %119 : vector<8x1xf32>
    %121 = vector.broadcast %113 : vector<8x1xf32> to vector<8x32xf32>
    %122 = arith.subf %105, %121 : vector<8x32xf32>
    %cst_89 = arith.constant 9.99999996E-13 : f32
    %123 = vector.broadcast %cst_89 : f32 to vector<8x1xf32>
    %124 = arith.addf %120, %123 : vector<8x1xf32>
    %125 = math.rsqrt %124 : vector<8x1xf32>
    %126 = vector.broadcast %125 : vector<8x1xf32> to vector<8x32xf32>
    %127 = arith.mulf %122, %126 : vector<8x32xf32>
    %128 = vector.broadcast %107 : vector<1x32xf32> to vector<8x32xf32>
    %129 = arith.mulf %127, %128 : vector<8x32xf32>
    %130 = vector.broadcast %109 : vector<1x32xf32> to vector<8x32xf32>
    %131 = arith.addf %129, %130 : vector<8x32xf32>
    %132 = arith.truncf %131 : vector<8x32xf32> to vector<8x32xbf16>
    %c0_90 = arith.constant 0 : index
    %c0_91 = arith.constant 0 : index
    %c0_92 = arith.constant 0 : index
    %133 = vector.load %arg16[%c0_90, %c0_91, %c0_92] : memref<1x32x64xbf16, #tpu.memory_space<vmem>>, vector<1x32x64xbf16>
    %134 = vector.shape_cast %133 : vector<1x32x64xbf16> to vector<32x64xbf16>
    %cst_93 = arith.constant dense<0.000000e+00> : vector<8x64xf32>
    %135 = tpu.matmul %132, %134, %cst_93 {dimension_numbers = #tpu.dot_dimension_numbers<[1], [0], [0], [1], [0, 0, 1, 1], [], []>} : vector<8x32xbf16>, vector<32x64xbf16>, vector<8x64xf32> -> vector<8x64xf32>
    %c0_94 = arith.constant 0 : index
    %c0_95 = arith.constant 0 : index
    %c0_96 = arith.constant 0 : index
    %136 = vector.load %arg17[%c0_94, %c0_95, %c0_96] : memref<1x1x64xf32, #tpu.memory_space<vmem>>, vector<1x1x64xf32>
    %137 = vector.shape_cast %136 : vector<1x1x64xf32> to vector<1x64xf32>
    %138 = vector.broadcast %137 : vector<1x64xf32> to vector<8x64xf32>
    %139 = arith.addf %135, %138 : vector<8x64xf32>
    %140 = arith.mulf %139, %139 : vector<8x64xf32>
    %141 = arith.mulf %139, %140 : vector<8x64xf32>
    %cst_97 = arith.constant 4.471500e-02 : f32
    %142 = vector.broadcast %cst_97 : f32 to vector<8x64xf32>
    %143 = arith.mulf %142, %141 : vector<8x64xf32>
    %144 = arith.addf %139, %143 : vector<8x64xf32>
    %cst_98 = arith.constant 0.797884583 : f32
    %145 = vector.broadcast %cst_98 : f32 to vector<8x64xf32>
    %146 = arith.mulf %145, %144 : vector<8x64xf32>
    %147 = math.tanh %146 : vector<8x64xf32>
    %cst_99 = arith.constant 1.000000e+00 : f32
    %148 = vector.broadcast %cst_99 : f32 to vector<8x64xf32>
    %149 = arith.addf %148, %147 : vector<8x64xf32>
    %cst_100 = arith.constant 5.000000e-01 : f32
    %150 = vector.broadcast %cst_100 : f32 to vector<8x64xf32>
    %151 = arith.mulf %150, %149 : vector<8x64xf32>
    %152 = arith.mulf %139, %151 : vector<8x64xf32>
    %153 = arith.truncf %152 : vector<8x64xf32> to vector<8x64xbf16>
    %c0_101 = arith.constant 0 : index
    %c0_102 = arith.constant 0 : index
    %c0_103 = arith.constant 0 : index
    %154 = vector.load %arg18[%c0_101, %c0_102, %c0_103] : memref<1x64x32xbf16, #tpu.memory_space<vmem>>, vector<1x64x32xbf16>
    %155 = vector.shape_cast %154 : vector<1x64x32xbf16> to vector<64x32xbf16>
    %cst_104 = arith.constant dense<0.000000e+00> : vector<8x32xf32>
    %156 = tpu.matmul %153, %155, %cst_104 {dimension_numbers = #tpu.dot_dimension_numbers<[1], [0], [0], [1], [0, 0, 1, 1], [], []>} : vector<8x64xbf16>, vector<64x32xbf16>, vector<8x32xf32> -> vector<8x32xf32>
    %c0_105 = arith.constant 0 : index
    %c0_106 = arith.constant 0 : index
    %c0_107 = arith.constant 0 : index
    %157 = vector.load %arg19[%c0_105, %c0_106, %c0_107] : memref<1x1x32xf32, #tpu.memory_space<vmem>>, vector<1x1x32xf32>
    %158 = vector.shape_cast %157 : vector<1x1x32xf32> to vector<1x32xf32>
    %159 = vector.broadcast %158 : vector<1x32xf32> to vector<8x32xf32>
    %160 = arith.addf %156, %159 : vector<8x32xf32>
    %161 = arith.addf %160, %131 : vector<8x32xf32>
    %c0_108 = arith.constant 0 : index
    %c0_109 = arith.constant 0 : index
    %c0_110 = arith.constant 0 : index
    %162 = vector.load %arg20[%c0_108, %c0_109, %c0_110] : memref<1x1x32xf32, #tpu.memory_space<vmem>>, vector<1x1x32xf32>
    %163 = vector.shape_cast %162 : vector<1x1x32xf32> to vector<1x32xf32>
    %c0_111 = arith.constant 0 : index
    %c0_112 = arith.constant 0 : index
    %c0_113 = arith.constant 0 : index
    %164 = vector.load %arg21[%c0_111, %c0_112, %c0_113] : memref<1x1x32xf32, #tpu.memory_space<vmem>>, vector<1x1x32xf32>
    %165 = vector.shape_cast %164 : vector<1x1x32xf32> to vector<1x32xf32>
    %cst_114 = arith.constant dense<0.000000e+00> : vector<8xf32>
    %166 = vector.multi_reduction <add>, %161, %cst_114 [1] : vector<8x32xf32> to vector<8xf32>
    %167 = vector.shape_cast %166 : vector<8xf32> to vector<8x1xf32>
    %cst_115 = arith.constant 3.200000e+01 : f32
    %168 = vector.broadcast %cst_115 : f32 to vector<8x1xf32>
    %169 = arith.divf %167, %168 : vector<8x1xf32>
    %170 = vector.broadcast %169 : vector<8x1xf32> to vector<8x32xf32>
    %171 = arith.subf %161, %170 : vector<8x32xf32>
    %172 = arith.mulf %171, %171 : vector<8x32xf32>
    %cst_116 = arith.constant dense<0.000000e+00> : vector<8xf32>
    %173 = vector.multi_reduction <add>, %172, %cst_116 [1] : vector<8x32xf32> to vector<8xf32>
    %174 = vector.shape_cast %173 : vector<8xf32> to vector<8x1xf32>
    %cst_117 = arith.constant 3.200000e+01 : f32
    %175 = vector.broadcast %cst_117 : f32 to vector<8x1xf32>
    %176 = arith.divf %174, %175 : vector<8x1xf32>
    %177 = vector.broadcast %169 : vector<8x1xf32> to vector<8x32xf32>
    %178 = arith.subf %161, %177 : vector<8x32xf32>
    %cst_118 = arith.constant 9.99999996E-13 : f32
    %179 = vector.broadcast %cst_118 : f32 to vector<8x1xf32>
    %180 = arith.addf %176, %179 : vector<8x1xf32>
    %181 = math.rsqrt %180 : vector<8x1xf32>
    %182 = vector.broadcast %181 : vector<8x1xf32> to vector<8x32xf32>
    %183 = arith.mulf %178, %182 : vector<8x32xf32>
    %184 = vector.broadcast %163 : vector<1x32xf32> to vector<8x32xf32>
    %185 = arith.mulf %183, %184 : vector<8x32xf32>
    %186 = vector.broadcast %165 : vector<1x32xf32> to vector<8x32xf32>
    %187 = arith.addf %185, %186 : vector<8x32xf32>
    %c0_119 = arith.constant 0 : index
    %c0_120 = arith.constant 0 : index
    %188 = vector.load %arg27[%c0_119, %c0_120] : memref<8x32xf32, #tpu.memory_space<vmem>>, vector<8x32xf32>
    tpu.vector_store %arg27[%c0_119, %c0_120], %187 {strides = array<i32>} : memref<8x32xf32, #tpu.memory_space<vmem>>, vector<8x32xf32>,
    %c1_i32 = arith.constant 1 : i32
    %189 = arith.cmpi eq, %arg1, %c1_i32 : i32
    %190 = arith.extui %189 : i1 to i32
    %c0_i32_121 = arith.constant 0 : i32
    %191 = arith.cmpi ne, %190, %c0_i32_121 : i32
    scf.if %191 {
      %192 = vector.shape_cast %187 : vector<8x32xf32> to vector<1x8x32xf32>
      %193 = vector.extract_strided_slice %192 {offsets = [0, 0, 0], sizes = [1, 1, 32], strides = [1, 1, 1]} : vector<1x8x32xf32> to vector<1x1x32xf32>
      %194 = vector.shape_cast %193 : vector<1x1x32xf32> to vector<1x32xf32>
      %195 = arith.truncf %194 : vector<1x32xf32> to vector<1x32xbf16>
      %c0_122 = arith.constant 0 : index
      %c0_123 = arith.constant 0 : index
      %196 = vector.load %arg22[%c0_122, %c0_123] : memref<32x32xbf16, #tpu.memory_space<vmem>>, vector<32x32xbf16>
      %cst_124 = arith.constant dense<0.000000e+00> : vector<1x32xf32>
      %197 = tpu.matmul %195, %196, %cst_124 {dimension_numbers = #tpu.dot_dimension_numbers<[1], [0], [0], [1], [0, 0, 1, 1], [], []>} : vector<1x32xbf16>, vector<32x32xbf16>, vector<1x32xf32> -> vector<1x32xf32>
      %c0_125 = arith.constant 0 : index
      %c0_126 = arith.constant 0 : index
      %198 = vector.load %arg23[%c0_125, %c0_126] : memref<1x32xf32, #tpu.memory_space<vmem>>, vector<1x32xf32>
      %199 = arith.addf %197, %198 : vector<1x32xf32>
      %200 = math.tanh %199 : vector<1x32xf32>
      %201 = arith.truncf %200 : vector<1x32xf32> to vector<1x32xbf16>
      %c0_127 = arith.constant 0 : index
      %c0_128 = arith.constant 0 : index
      %202 = vector.load %arg24[%c0_127, %c0_128] : memref<32x3xbf16, #tpu.memory_space<vmem>>, vector<32x3xbf16>
      %cst_129 = arith.constant dense<0.000000e+00> : vector<1x3xf32>
      %203 = tpu.matmul %201, %202, %cst_129 {dimension_numbers = #tpu.dot_dimension_numbers<[1], [0], [0], [1], [0, 0, 1, 1], [], []>} : vector<1x32xbf16>, vector<32x3xbf16>, vector<1x3xf32> -> vector<1x3xf32>
      %c0_130 = arith.constant 0 : index
      %c0_131 = arith.constant 0 : index
      %204 = vector.load %arg25[%c0_130, %c0_131] : memref<1x3xf32, #tpu.memory_space<vmem>>, vector<1x3xf32>
      %205 = arith.addf %203, %204 : vector<1x3xf32>
      %cst_132 = arith.constant dense<0xFF800000> : vector<1xf32>
      %206 = vector.multi_reduction <maximumf>, %205, %cst_132 [1] : vector<1x3xf32> to vector<1xf32>
      %207 = vector.shape_cast %206 : vector<1xf32> to vector<1x1xf32>
      %208 = vector.broadcast %207 : vector<1x1xf32> to vector<1x3xf32>
      %209 = arith.subf %205, %208 : vector<1x3xf32>
      %210 = math.exp %209 : vector<1x3xf32>
      %cst_133 = arith.constant dense<0.000000e+00> : vector<1xf32>
      %211 = vector.multi_reduction <add>, %210, %cst_133 [1] : vector<1x3xf32> to vector<1xf32>
      %212 = vector.shape_cast %211 : vector<1xf32> to vector<1x1xf32>
      %213 = vector.broadcast %212 : vector<1x1xf32> to vector<1x3xf32>
      %214 = arith.divf %210, %213 : vector<1x3xf32>
      %215 = vector.shape_cast %214 : vector<1x3xf32> to vector<1x1x3xf32>
      %c0_134 = arith.constant 0 : index
      %c0_135 = arith.constant 0 : index
      %c0_136 = arith.constant 0 : index
      %216 = vector.load %arg26[%c0_134, %c0_135, %c0_136] : memref<1x1x3xf32, #tpu.memory_space<vmem>>, vector<1x1x3xf32>
      tpu.vector_store %arg26[%c0_134, %c0_135, %c0_136], %215 {strides = array<i32>} : memref<1x1x3xf32, #tpu.memory_space<vmem>>, vector<1x1x3xf32>,
    } else {
    }
    return
  }
  func.func @transform_0(%arg0: i32, %arg1: i32) -> (i32, i32, i32) {
    %c0_i32 = arith.constant 0 : i32
    %c0_i32_0 = arith.constant 0 : i32
    %c0_i32_1 = arith.constant 0 : i32
    return %arg0, %c0_i32, %c0_i32_0 : i32, i32, i32
  }
  func.func @transform_1(%arg0: i32, %arg1: i32) -> (i32, i32, i32) {
    %c0_i32 = arith.constant 0 : i32
    %c0_i32_0 = arith.constant 0 : i32
    %c0_i32_1 = arith.constant 0 : i32
    return %arg0, %c0_i32, %c0_i32_0 : i32, i32, i32
  }
  func.func @transform_2(%arg0: i32, %arg1: i32) -> (i32, i32) {
    %c0_i32 = arith.constant 0 : i32
    %c0_i32_0 = arith.constant 0 : i32
    %c0_i32_1 = arith.constant 0 : i32
    return %c0_i32, %c0_i32_0 : i32, i32
  }
  func.func @transform_3(%arg0: i32, %arg1: i32) -> (i32, i32) {
    %c0_i32 = arith.constant 0 : i32
    %c0_i32_0 = arith.constant 0 : i32
    %c0_i32_1 = arith.constant 0 : i32
    return %c0_i32, %c0_i32_0 : i32, i32
  }
  func.func @transform_4(%arg0: i32, %arg1: i32) -> (i32, i32, i32, i32) {
    %c0_i32 = arith.constant 0 : i32
    %c0_i32_0 = arith.constant 0 : i32
    %c0_i32_1 = arith.constant 0 : i32
    %c0_i32_2 = arith.constant 0 : i32
    return %arg1, %c0_i32, %c0_i32_0, %c0_i32_1 : i32, i32, i32, i32
  }
  func.func @transform_5(%arg0: i32, %arg1: i32) -> (i32, i32, i32, i32) {
    %c0_i32 = arith.constant 0 : i32
    %c0_i32_0 = arith.constant 0 : i32
    %c0_i32_1 = arith.constant 0 : i32
    %c0_i32_2 = arith.constant 0 : i32
    return %arg1, %c0_i32, %c0_i32_0, %c0_i32_1 : i32, i32, i32, i32
  }
  func.func @transform_6(%arg0: i32, %arg1: i32) -> (i32, i32, i32, i32) {
    %c0_i32 = arith.constant 0 : i32
    %c0_i32_0 = arith.constant 0 : i32
    %c0_i32_1 = arith.constant 0 : i32
    %c0_i32_2 = arith.constant 0 : i32
    return %arg1, %c0_i32, %c0_i32_0, %c0_i32_1 : i32, i32, i32, i32
  }
  func.func @transform_7(%arg0: i32, %arg1: i32) -> (i32, i32, i32, i32) {
    %c0_i32 = arith.constant 0 : i32
    %c0_i32_0 = arith.constant 0 : i32
    %c0_i32_1 = arith.constant 0 : i32
    %c0_i32_2 = arith.constant 0 : i32
    return %arg1, %c0_i32, %c0_i32_0, %c0_i32_1 : i32, i32, i32, i32
  }
  func.func @transform_8(%arg0: i32, %arg1: i32) -> (i32, i32, i32, i32) {
    %c0_i32 = arith.constant 0 : i32
    %c0_i32_0 = arith.constant 0 : i32
    %c0_i32_1 = arith.constant 0 : i32
    %c0_i32_2 = arith.constant 0 : i32
    return %arg1, %c0_i32, %c0_i32_0, %c0_i32_1 : i32, i32, i32, i32
  }
  func.func @transform_9(%arg0: i32, %arg1: i32) -> (i32, i32, i32, i32) {
    %c0_i32 = arith.constant 0 : i32
    %c0_i32_0 = arith.constant 0 : i32
    %c0_i32_1 = arith.constant 0 : i32
    %c0_i32_2 = arith.constant 0 : i32
    return %arg1, %c0_i32, %c0_i32_0, %c0_i32_1 : i32, i32, i32, i32
  }
  func.func @transform_10(%arg0: i32, %arg1: i32) -> (i32, i32, i32, i32) {
    %c0_i32 = arith.constant 0 : i32
    %c0_i32_0 = arith.constant 0 : i32
    %c0_i32_1 = arith.constant 0 : i32
    %c0_i32_2 = arith.constant 0 : i32
    return %arg1, %c0_i32, %c0_i32_0, %c0_i32_1 : i32, i32, i32, i32
  }
  func.func @transform_11(%arg0: i32, %arg1: i32) -> (i32, i32, i32) {
    %c0_i32 = arith.constant 0 : i32
    %c0_i32_0 = arith.constant 0 : i32
    %c0_i32_1 = arith.constant 0 : i32
    return %arg1, %c0_i32, %c0_i32_0 : i32, i32, i32
  }
  func.func @transform_12(%arg0: i32, %arg1: i32) -> (i32, i32, i32) {
    %c0_i32 = arith.constant 0 : i32
    %c0_i32_0 = arith.constant 0 : i32
    %c0_i32_1 = arith.constant 0 : i32
    return %arg1, %c0_i32, %c0_i32_0 : i32, i32, i32
  }
  func.func @transform_13(%arg0: i32, %arg1: i32) -> (i32, i32, i32) {
    %c0_i32 = arith.constant 0 : i32
    %c0_i32_0 = arith.constant 0 : i32
    %c0_i32_1 = arith.constant 0 : i32
    return %arg1, %c0_i32, %c0_i32_0 : i32, i32, i32
  }
  func.func @transform_14(%arg0: i32, %arg1: i32) -> (i32, i32, i32) {
    %c0_i32 = arith.constant 0 : i32
    %c0_i32_0 = arith.constant 0 : i32
    %c0_i32_1 = arith.constant 0 : i32
    return %arg1, %c0_i32, %c0_i32_0 : i32, i32, i32
  }
  func.func @transform_15(%arg0: i32, %arg1: i32) -> (i32, i32, i32) {
    %c0_i32 = arith.constant 0 : i32
    %c0_i32_0 = arith.constant 0 : i32
    %c0_i32_1 = arith.constant 0 : i32
    return %arg1, %c0_i32, %c0_i32_0 : i32, i32, i32
  }
  func.func @transform_16(%arg0: i32, %arg1: i32) -> (i32, i32, i32) {
    %c0_i32 = arith.constant 0 : i32
    %c0_i32_0 = arith.constant 0 : i32
    %c0_i32_1 = arith.constant 0 : i32
    return %arg1, %c0_i32, %c0_i32_0 : i32, i32, i32
  }
  func.func @transform_17(%arg0: i32, %arg1: i32) -> (i32, i32, i32) {
    %c0_i32 = arith.constant 0 : i32
    %c0_i32_0 = arith.constant 0 : i32
    %c0_i32_1 = arith.constant 0 : i32
    return %arg1, %c0_i32, %c0_i32_0 : i32, i32, i32
  }
  func.func @transform_18(%arg0: i32, %arg1: i32) -> (i32, i32, i32) {
    %c0_i32 = arith.constant 0 : i32
    %c0_i32_0 = arith.constant 0 : i32
    %c0_i32_1 = arith.constant 0 : i32
    return %arg1, %c0_i32, %c0_i32_0 : i32, i32, i32
  }
  func.func @transform_19(%arg0: i32, %arg1: i32) -> (i32, i32, i32) {
    %c0_i32 = arith.constant 0 : i32
    %c0_i32_0 = arith.constant 0 : i32
    %c0_i32_1 = arith.constant 0 : i32
    return %arg1, %c0_i32, %c0_i32_0 : i32, i32, i32
  }
  func.func @transform_20(%arg0: i32, %arg1: i32) -> (i32, i32) {
    %c0_i32 = arith.constant 0 : i32
    %c0_i32_0 = arith.constant 0 : i32
    %c0_i32_1 = arith.constant 0 : i32
    return %c0_i32, %c0_i32_0 : i32, i32
  }
  func.func @transform_21(%arg0: i32, %arg1: i32) -> (i32, i32) {
    %c0_i32 = arith.constant 0 : i32
    %c0_i32_0 = arith.constant 0 : i32
    %c0_i32_1 = arith.constant 0 : i32
    return %c0_i32, %c0_i32_0 : i32, i32
  }
  func.func @transform_22(%arg0: i32, %arg1: i32) -> (i32, i32) {
    %c0_i32 = arith.constant 0 : i32
    %c0_i32_0 = arith.constant 0 : i32
    %c0_i32_1 = arith.constant 0 : i32
    return %c0_i32, %c0_i32_0 : i32, i32
  }
  func.func @transform_23(%arg0: i32, %arg1: i32) -> (i32, i32) {
    %c0_i32 = arith.constant 0 : i32
    %c0_i32_0 = arith.constant 0 : i32
    %c0_i32_1 = arith.constant 0 : i32
    return %c0_i32, %c0_i32_0 : i32, i32
  }
  func.func @transform_24(%arg0: i32, %arg1: i32) -> (i32, i32, i32) {
    %c0_i32 = arith.constant 0 : i32
    %c0_i32_0 = arith.constant 0 : i32
    %c0_i32_1 = arith.constant 0 : i32
    return %arg0, %c0_i32, %c0_i32_0 : i32, i32, i32
  }
}

</mosaic_0001>

<bundles_post_ra>
// kernel: tpu_custom_call.1
= control target key start
LH: loop header
LB: loop body
LE: loop exit
PB: predicated region body
PF: predicated region fallthrough
CT: control target
= control target key end

     0   :  { %s3449_s0 = inlined_call_operand.vmem [shape: f32[2,8,32], index: 0, kind: input, shape index: {}]   ;;  %s3450_s1 = inlined_call_operand.vmem [shape: f32[2,1,8], index: 1, kind: input, shape index: {}]   ;;  %s3451_s2 = inlined_call_operand.vmem [shape: f32[1,32], index: 2, kind: input, shape index: {}]   ;;  %s3452_s3 = inlined_call_operand.vmem [shape: f32[1,32], index: 3, kind: input, shape index: {}]   ;;  %s3453_s4 = inlined_call_operand.vmem [shape: bf16[2,2,32,16], index: 4, kind: input, shape index: {}]   ;;  %s3454_s5 = inlined_call_operand.vmem [shape: f32[2,2,1,16], index: 5, kind: input, shape index: {}]   ;;  %s3455_s6 = inlined_call_operand.vmem [shape: bf16[2,2,32,16], index: 6, kind: input, shape index: {}]   ;;  %s3456_s7 = inlined_call_operand.vmem [shape: f32[2,2,1,16], index: 7, kind: input, shape index: {}]   ;;  %s3457_s8 = inlined_call_operand.vmem [shape: bf16[2,2,32,16], index: 8, kind: input, shape index: {}]   ;;  %s3458_s9 = inlined_call_operand.vmem [shape: f32[2,2,1,16], index: 9, kind: input, shape index: {}]   ;;  %s3459_s10 = inlined_call_operand.vmem [shape: bf16[2,2,16,32], index: 10, kind: input, shape index: {}]   ;;  %s3460_s11 = inlined_call_operand.vmem [shape: f32[2,1,32], index: 11, kind: input, shape index: {}]   ;;  %s3461_s12 = inlined_call_operand.vmem [shape: f32[2,1,32], index: 12, kind: input, shape index: {}]   ;;  %s3462_s13 = inlined_call_operand.vmem [shape: f32[2,1,32], index: 13, kind: input, shape index: {}]   ;;  %s3463_s14 = inlined_call_operand.vmem [shape: bf16[2,32,64], index: 14, kind: input, shape index: {}]   ;;  %s3464_s15 = inlined_call_operand.vmem [shape: f32[2,1,64], index: 15, kind: input, shape index: {}]   ;;  %s3465_s16 = inlined_call_operand.vmem [shape: bf16[2,64,32], index: 16, kind: input, shape index: {}]   ;;  %s3466_s17 = inlined_call_operand.vmem [shape: f32[2,1,32], index: 17, kind: input, shape index: {}]   ;;  %s3467_s18 = inlined_call_operand.vmem [shape: f32[2,1,32], index: 18, kind: input, shape index: {}]   ;;  %s3468_s19 = inlined_call_operand.vmem [shape: f32[2,1,32], index: 19, kind: input, shape index: {}]   ;;  %s3469_s20 = inlined_call_operand.vmem [shape: bf16[32,32], index: 20, kind: input, shape index: {}]   ;;  %s3470_s21 = inlined_call_operand.vmem [shape: f32[1,32], index: 21, kind: input, shape index: {}]   ;;  %s3471_s22 = inlined_call_operand.vmem [shape: bf16[32,3], index: 22, kind: input, shape index: {}]   ;;  %s3472_s23 = inlined_call_operand.vmem [shape: f32[1,3], index: 23, kind: input, shape index: {}]   ;;  %s3473_s24 = inlined_call_operand.hbm [shape: f32[2,1,3], index: 24, kind: output, shape index: {}]  }
   0x1   :  { %3495 = sst [smem:[#allocation24_spill]] %s3449_s0 }
   0x2   :  { %3496 = sst [smem:[#allocation25_spill]] %s3450_s1 }
   0x3   :  { %3497 = sst [smem:[#allocation26_spill]] %s3451_s2 }
   0x4   :  { %3498 = sst [smem:[#allocation27_spill]] %s3452_s3 }
   0x5   :  { %3499 = sst [smem:[#allocation28_spill]] %s3453_s4 }
   0x6   :  { %3500 = sst [smem:[#allocation29_spill]] %s3454_s5 }
   0x7   :  { %3501 = sst [smem:[#allocation30_spill]] %s3455_s6 }
   0x8   :  { %3502 = sst [smem:[#allocation31_spill]] %s3456_s7 }
   0x9   :  { %3503 = sst [smem:[#allocation32_spill]] %s3457_s8 }
   0xa   :  { %3504 = sst [smem:[#allocation33_spill]] %s3458_s9 }
   0xb   :  { %3505 = sst [smem:[#allocation34_spill]] %s3459_s10 }
   0xc   :  { %3506 = sst [smem:[#allocation35_spill]] %s3463_s14 }
   0xd   :  { %3507 = sst [smem:[#allocation36_spill]] %s3468_s19 }
   0xe   :  { %3508 = sst [smem:[#allocation37_spill]] %s3469_s20 }
   0xf   :  { %3509 = sst [smem:[#allocation38_spill]] %s3470_s21 }
  0x10   :  { %3510 = sst [smem:[#allocation39_spill]] %s3471_s22 }
  0x11   :  { %3511 = sst [smem:[#allocation40_spill]] %s3472_s23 }
  0x12   :  { %3512 = sst [smem:[#allocation41_spill]] %s3473_s24 }
  0x13   :  { %29 = vsyncpa [#allocation4], 0 }
  0x14   :  { %31 = vsyncpa [#allocation4 + $0x1], 0  ;;  %s3029_s5 = smov 0   ;;  %s3031_s26 = smov 0  }
  0x15   :  { %s3033_s27 = smov 0   ;;  %s3035_s28 = smov 0  }
  0x16   :  { %s3037_s6 = smov 0   ;;  %s3039_s2 = smov 0  }
  0x17   :  { %s3041_s29 = smov 0   ;;  %s3043_s0 = smov 0  }
  0x18 LB: > { %3513 = sst [smem:[#allocation6_spill]] %s2869_s5  ;;  %s2413_s7 = sadd.s32 4294967295, %s2897_s0   ;;  %s2897_s0 = sphi %s3043_s0, %s37_s0   ;;  %s2893_s29 = sphi %s3041_s29, %s3580_s29   ;;  %s2889_s2 = sphi %s3039_s2, %s3579_s2   ;;  %s2885_s6 = sphi %s3037_s6, %s3578_s6   ;;  %s2881_s28 = sphi %s3035_s28, %s3577_s28   ;;  %s2877_s27 = sphi %s3033_s27, %s3576_s27   ;;  %s2873_s26 = sphi %s3031_s26, %s3582_s26   ;;  %s2869_s5 = sphi %s3029_s5, %s3581_s5  }
  0x19   : > { %3514 = sst [smem:[#allocation7_spill]] %s2877_s27  ;;  %s2414_s30 = sadd.s32 4294967294, %s2897_s0  }
  0x1a   : > { %3515 = sst [smem:[#allocation8_spill]] %s2881_s28  ;;  %s46_s3 = sadd.s32 1, %s2889_s2 }
  0x1b   : > { %3516 = sst [smem:[#allocation9_spill]] %s2885_s6  ;;  %p47_p0 = scmp.ge.s32.totalorder %s46_s3, 2 }
  0x1c   : > { %3517 = sst [smem:[#allocation10_spill]] %s2889_s2  ;;  %s49_s25 = sadd.s32 1, %s2893_s29 }
  0x1d   : > { %3518 = sst [smem:[#allocation11_spill]] %s2893_s29  ;;  %p660_p1 = scmp.ne.s32.totalorder %s2877_s27, %s2873_s26 }
  0x1e   : > { %3519 = sst [smem:[#allocation12_spill]] %s2897_s0  ;;  %p661_p2 = scmp.eq.s32.totalorder %s2413_s7, 3 }
  0x1f   : > { %s3584_s3 = smov (%p47_p0, %s46_s3), 0  ;;  %s3586_s25 = smov (!%p47_p0, %s49_s25), %s2893_s29 }
  0x20   : > { %3520 = sst [smem:[#allocation13_spill]] %s3584_s3  ;;  %p3078_p3 = por %p661_p2, %p660_p1 }
  0x21   : > { %p666_p4 = scmp.ne.s32.totalorder %s2873_s26, %s2869_s5  ;;  %p51_p5 = scmp.ge.s32.totalorder %s3586_s25, 2 }
  0x22   : > { %s3521_s8 = scalar_select %p3078_p3, 1, 0 }
  0x23   : > { %p667_p6 = scmp.eq.s32.totalorder %s2414_s30, 3  ;;  %p2417_p7 = scmp.ge.s32.totalorder %s2897_s0, 1 }
  0x24   : > { %3522 = sst [smem:[#allocation14_spill]] %s3521_s8  ;;  %p827_p8 = scmp.lt.s32.totalorder %s2897_s0, 5 }
  0x25   : > { %s3588_s25 = smov (%p51_p5, %s3586_s25), 0  ;;  %p3088_p9 = por %p667_p6, %p666_p4 }
  0x26   : > { %3523 = sst [smem:[#allocation15_spill]] %s3588_s25  ;;  %p828_p10 = pnand %p2417_p7, %p827_p8 }
  0x27   : > { %s3524_s4 = scalar_select %p3088_p9, 1, 0 }
  0x28   : > { %s647_s1 = ssub.s32 %s2893_s29, %s3588_s25  ;;  %s650_s7 = sadd.s32 1, %s2877_s27 }
  0x29   : > { %3525 = sst [smem:[#allocation16_spill]] %s3524_s4  ;;  %p648_p11 = scmp.eq.s32.totalorder %s647_s1, 0 }
  0x2a   : > { %831 = sbr.rel (%p828_p10) target bundleno = 4225 (0x1081), region = 116 }
  0x2b   : > { %s3096_s3 = scalar_select %p648_p11, %s2877_s27, %s650_s7  }
  0x2d   : > { %3526 = sst [smem:[#allocation17_spill]] %s3096_s3 }
  0x31   : > { %p957_p12 = scmp.lt.s32.totalorder %s2885_s6, 1  ;;  %p964_p13 = scmp.lt.s32.totalorder %s2881_s28, 1 }
  0x32   : > { %s3529_s5 = sld [smem:[#allocation24_spill]]  ;;  %s3530_s23 = sld [smem:[#allocation28_spill]] }
  0x33   : > { %s3102_s2 = scalar_select %p957_p12, %s2885_s6, 1 }
  0x34   : > { %s3105_s4 = scalar_select %p964_p13, %s2881_s28, 1 }
  0x35   : > { %3527 = sst [smem:[#allocation18_spill]] %s3102_s2  ;;  %s2418_s1 = sshll.u32 %s3102_s2, 3 }
  0x36   : > { %s2512_s24 = sshll.u32 %s3105_s4, 5  ;;  %s2421_s22 = sshll.u32 %s3105_s4, 1 }
  0x37   : > { %s3532_s19 = sld [smem:[#allocation29_spill]]  ;;  %s3534_s27 = sld [smem:[#allocation30_spill]] }
  0x38   : > { %s960_s0 = scalar_lea.vmem %s3529_s5, %s2418_s1  ;;  %s3119_s21 = scalar_lea.vmem %s3530_s23, %s2512_s24 }
  0x39   : > { %3531 = sst [smem:[#allocation19_spill]] %s3119_s21  ;;  %s3538_s2 = sld [smem:[#allocation32_spill]] }
  0x3a   : > { %s3536_s6 = sld [smem:[#allocation31_spill]]  ;;  %s3539_s9 = sld [smem:[#allocation33_spill]] }
  0x3b   : > { %s3540_s10 = sld [smem:[#allocation34_spill]]  ;;  %s3542_s14 = sld [smem:[#allocation35_spill]] }
  0x3c   : > { %s3177_s30 = scalar_lea.vmem %s3465_s16, %s2512_s24  ;;  %s1023_s20 = scalar_lea.vmem %s3467_s18, %s3105_s4 }
  0x3d   : > { %s3125_s25 = scalar_lea.vmem %s3532_s19, %s2421_s22  ;;  %s3130_s5 = scalar_lea.vmem %s3534_s27, %s2512_s24 }
  0x3e   : > { %3533 = sst [smem:[#allocation20_spill]] %s3125_s25  ;;  %s2515_s25 = sshll.u32 %s3105_s4, 4 }
  0x3f   : > { %3535 = sst [smem:[#allocation21_spill]] %s3130_s5  ;;  %s3140_s21 = scalar_lea.vmem %s3538_s2, %s2512_s24 }
  0x40   : > { %s3135_s8 = scalar_lea.vmem %s3536_s6, %s2421_s22  ;;  %s3145_s19 = scalar_lea.vmem %s3539_s9, %s2421_s22 }
  0x41   : > { %3537 = sst [smem:[#allocation22_spill]] %s3135_s8  ;;  %s3151_s27 = scalar_lea.vmem %s3540_s10, %s2515_s25 }
  0x42   : > { %3541 = sst [smem:[#allocation23_spill]] %s3151_s27  ;;  %s3168_s9 = scalar_lea.vmem %s3542_s14, %s2515_s25 }
  0x43   : > { %s1012_s10 = scalar_lea.vmem %s3464_s15, %s3105_s4  ;;  %s1020_s2 = scalar_lea.vmem %s3466_s17, %s3105_s4 }
  0x44   : > { %s3543_s28 = sld [smem:[#allocation36_spill]]  ;;  %s3544_s14 = sand.u32 1, %s2873_s26  }
  0x45   : > { %s3193_s29 = scalar_lea.vmem [#allocation3], %s3544_s14  ;;  %s3545_s7 = sld [smem:[#allocation8_spill]] }
  0x4a   : > { %s1026_s1 = scalar_lea.vmem %s3543_s28, %s3105_s4 }
  0x4b   : > { %p2434_p0 = scmp.ne.s32.totalorder %s3545_s7, 0 }
  0x4c   : > { %v1032_v0 = vld [vmem:[%s960_s0] sm:$0xff] (!%p2434_p0)  ;;  %vm1035_vm0 = vcmask (!%p2434_p0), 261120   ;;  %s3546_s27 = sld [smem:[#allocation26_spill]] (!%p2434_p0)  ;;  %s3547_s8 = sld [smem:[#allocation27_spill]] (!%p2434_p0) }
  0x4d   : > { %1031 = sbr.rel (%p2434_p0) target bundleno = 391 (0x187), region = 120  ;;  %v1036_v1 = vsel (!%p2434_p0), %vm1035_vm0, %v1032_v0, 0.0 }
  0x4e   : > { %1037 = vadd.xlane.f32.xlu0 (!%p2434_p0), %v1036_v1 }
  0x52   : > { %v2435_v11 = vld [vmem:[%s3546_s27] ss:$0 sm:$0xff] (!%p2434_p0) }
  0x53   : > { %v2436_v13 = vld [vmem:[%s3547_s8] ss:$0 sm:$0xff] (!%p2434_p0) }
  0xdb   : > { %v1038_v2 = vpop.xlane.xlu0 %1037 }
  0xdc   : > { %v1040_v3 = vmul.f32 0.03125, %v1038_v2 }
  0xde   : > { %v1041_v4 = vsub.f32 %v1032_v0, %v1040_v3 }
  0xe0   : > { %v1042_v5 = vmul.f32 %v1041_v4, %v1041_v4 }
  0xe2   : > { %v1043_v6 = vsel %vm1035_vm0, %v1042_v5, 0.0 }
  0xe3   : > { %1044 = vadd.xlane.f32.xlu0 %v1043_v6 }
 0x170   : > { %v1045_v7 = vpop.xlane.xlu0 %1044 }
 0x171   : > { %v1046_v8 = vmul.f32 0.03125, %v1045_v7 }
 0x173   : > { %v1047_v9 = vadd.f32 1e-12, %v1046_v8 }
 0x175   : > { %2757 = vrsqrt.f32 %v1047_v9 }
 0x17f   : > { %v2758_v10 = vpop.eup %2757 }
 0x180   : > { %v1049_v12 = vmul.f32 %v2758_v10, %v1041_v4 }
 0x182   : > { %v1056_v14 = vmul.f32 %v2435_v11, %v1049_v12 }
 0x184   : > { %v1063_v15 = vadd.f32 %v2436_v13, %v1056_v14 }
 0x186   : > { %1064 = vst.msk [vmem:[#allocation2] sm:$0xff] %vm1035_vm0, %v1063_v15 }
 0x187 PF: > { %s3548_s6 = sld [smem:[#allocation21_spill]]  ;;  %s3549_s3 = sld [smem:[#allocation19_spill]]  ;;  %v2899_v17 = vmov 0.0   ;;  %vm2900_vm1 = vmmov 0   ;;  %vm1091_vm2 = vcmask 261120   ;;  %vm1270_vm3 = vcmask 130048  }
 0x188   : > { %2570 = vmatprep.subr.bf16.mxu1 %v2899_v17  ;;  %2562 = vmatprep.subr.bf16.mxu0 %v2899_v17  ;;  %s3550_s23 = sld [smem:[#allocation22_spill]]  ;;  %s3551_s22 = sld [smem:[#allocation20_spill]]  ;;  %v2763_v38 = vld [vmem:[%s3140_s21] sm:$0xff]   ;;  %v2764_v39 = vld [vmem:[%s3140_s21 + $0x8] sm:$0xff]   ;;  %vm1317_vm4 = vcmask 64512   ;;  %vm1333_vm5 = vcmask 1043456  }
 0x189   : > { %2574 = vmatprep.mubr.msk.bf16.mxu1 %vm2900_vm1, %v2899_v17  ;;  %2566 = vmatprep.mubr.msk.bf16.mxu0 %vm2900_vm1, %v2899_v17  ;;  %s3552_s25 = sld [smem:[#allocation18_spill]]  ;;  %s3553_s14 = sld [smem:[#allocation25_spill]]  ;;  %v2445_v55 = vld [vmem:[%s3145_s19] ss:$0 sm:$0xff]  ;;  %vm1939_vm6 = vcmask 523264  }
 0x18a   : > { %s3556_s0 = scalar_lea.vmem %s3460_s11, %s3105_s4 }
 0x18d   : > { %v2759_v16 = vld [vmem:[%s3548_s6] sm:$0xff]   ;;  %v2760_v18 = vld [vmem:[%s3548_s6 + $0x8] sm:$0xff]   ;;  %v2767_v60 = vld [vmem:[%s3549_s3 + $0x10] sm:$0xff]  }
 0x18e   : > { %2571 = vmatpush3.bf16.msra.mxu1 %v2759_v16  ;;  %v2761_v19 = vld [vmem:[%s3549_s3] sm:$0xff]   ;;  %v2762_v21 = vld [vmem:[%s3549_s3 + $0x8] sm:$0xff]   ;;  %v2768_v61 = vld [vmem:[%s3549_s3 + $0x18] sm:$0xff]  }
 0x18f   : > { %2572 = vmatprep.subr.bf16.mxu1 %v2899_v17  ;;  %v3213_v20 = vld [vmem:[#allocation2] sm:$0xff]  ;;  %2563 = vmatpush3.bf16.msra.mxu0 %v2761_v19  ;;  %s3554_s24 = scalar_lea.vmem %s3553_s14, %s3552_s25  ;;  %v2765_v1 = vld [vmem:[%s3548_s6 + $0x10] sm:$0xff]   ;;  %v2766_v3 = vld [vmem:[%s3548_s6 + $0x18] sm:$0xff]   ;;  %s3557_s6 = scalar_lea.vmem %s3461_s12, %s3105_s4 }
 0x190   : > { %v3220_v22 = vpack.c.bf16 %v3213_v20, %v3213_v20  ;;  %2564 = vmatprep.subr.bf16.mxu0 %v2899_v17  ;;  %v2441_v23 = vld [vmem:[%s3550_s23] ss:$0 sm:$0xff]  ;;  %v2466_v12 = vld [vmem:[%s3550_s23 + $0x1] ss:$0 sm:$0xff] }
 0x191   : > { %v2437_v28 = vld [vmem:[%s3551_s22] ss:$0 sm:$0xff] }
 0x192   : > { %2573 = vmatpush3.bf16.msra.mxu1 %v2760_v18  ;;  %v3253_v40 = vld [vmem:[%s3554_s24] ss:$0 sm:$0xff]  ;;  %v2457_v18 = vld [vmem:[%s3551_s22 + $0x1] ss:$0 sm:$0xff]  ;;  %s3558_s22 = scalar_lea.vmem %s3462_s13, %s3105_s4 }
 0x193   : > { %2586 = vmatprep.subr.bf16.mxu1 %v2899_v17  ;;  %2565 = vmatpush3.bf16.msra.mxu0 %v2762_v21 }
 0x194   : > { %2578 = vmatprep.subr.bf16.mxu0 %v2899_v17 }
 0x195   : > { %2575 = vmatmul.mubr.msk.bf16.vlgmr.msra.gmra.mrb[0].mxu1 %vm1091_vm2, %v3220_v22 }
 0x196   : > { %2588 = vmatprep.mubr.msk.bf16.mxu1 %vm2900_vm1, %v2899_v17  ;;  %2567 = vmatmul.mubr.msk.bf16.vlgmr.msra.gmra.mrb[0].mxu0 %vm1091_vm2, %v3220_v22 }
 0x197   : > { %2582 = vmatprep.mubr.msk.bf16.mxu0 %vm2900_vm1, %v2899_v17  ;;  %2579 = vmatpush3.bf16.msra.mxu0 %v2763_v38 }
 0x198   : > { %2580 = vmatprep.subr.bf16.mxu0 %v2899_v17 }
 0x19b   : > { %2581 = vmatpush3.bf16.msra.mxu0 %v2764_v39 }
 0x19c   : > { %2592 = vmatprep.subr.bf16.mxu0 %v2899_v17 }
 0x19e   : > { %2583 = vmatmul.mubr.msk.bf16.vlgmr.msra.gmra.mrb[4].mxu0 %vm1091_vm2, %v3220_v22 }
 0x19f   : > { %2594 = vmatprep.mubr.msk.bf16.mxu0 %vm2900_vm1, %v2899_v17 }
 0x268   : > { %v1192_v24 = vpop.f32.mrb[0].mxu1 }
 0x269   : > { %v1193_v25 = vadd.f32 %v2441_v23, %v1192_v24  ;;  %v2576_v26 = vpop.f32.mrb[1].mxu1  ;;  %v1129_v29 = vpop.f32.mrb[0].mxu0 }
 0x26a   : > { %v1195_v27 = vpop.f32.mrb[2].mxu1  ;;  %v2568_v32 = vpop.f32.mrb[1].mxu0  ;;  %v1130_v35 = vadd.f32 %v2437_v28, %v1129_v29  ;;  %v2769_v26 = vld [vmem:[%s3140_s21 + $0x10] sm:$0xff]  }
 0x26b   : > { %v1262_v30 = vpack.c.bf16 %v1193_v25, %v1193_v25  ;;  %v2577_v31 = vpop.f32.mrb[3].mxu1  ;;  %v1132_v33 = vpop.f32.mrb[2].mxu0  ;;  %v2770_v27 = vld [vmem:[%s3140_s21 + $0x18] sm:$0xff]   ;;  %s3555_s21 = sld [smem:[#allocation23_spill]] }
 0x26c   : > { %v2569_v36 = vpop.f32.mrb[3].mxu0  ;;  %v1261_v37 = vpack.c.bf16 %v1130_v35, %v1130_v35 }
 0x26d   : > { %v1275_v34 = vsel %vm1270_vm3, %v1262_v30, 0 }
 0x26e   : > { %2587 = vmatpush3.bf16.xpose.msra.mxu1 %v1275_v34  ;;  %v2475_v34 = vld [vmem:[%s3145_s19 + $0x1] ss:$0 sm:$0xff] }
 0x26f   : > { %2598 = vmatprep.subr.bf16.mxu1 %v2899_v17 }
 0x271   : > { %v1255_v52 = vpop.f32.mrb[4].mxu0 }
 0x272   : > { %v2584_v53 = vpop.f32.mrb[5].mxu0  ;;  %v1256_v57 = vadd.f32 %v2445_v55, %v1255_v52 }
 0x273   : > { %v1258_v54 = vpop.f32.mrb[6].mxu0 }
 0x274   : > { %v2585_v56 = vpop.f32.mrb[7].mxu0  ;;  %v1263_v58 = vpack.c.bf16 %v1256_v57, %v1256_v57 }
 0x275   : > { %2589 = vmatmul.mubr.msk.bf16.vlgmr.msra.gmra.mrb[4].mxu1 %vm1270_vm3, %v1261_v37 }
 0x276   : > { %2602 = vmatprep.mubr.msk.bf16.mxu1 %vm2900_vm1, %v2899_v17  ;;  %v1335_v59 = vsel %vm1333_vm5, %v1263_v58, 0  ;;  %2599 = vmatpush3.bf16.msra.mxu1 %v2767_v60 }
 0x277   : > { %2593 = vmatpush3.bf16.msra.mxu0 %v1335_v59  ;;  %2600 = vmatprep.subr.bf16.mxu1 %v2899_v17 }
 0x278   : > { %2606 = vmatprep.subr.bf16.mxu0 %v2899_v17 }
 0x27a   : > { %2601 = vmatpush3.bf16.msra.mxu1 %v2768_v61 }
 0x27b   : > { %2614 = vmatprep.subr.bf16.mxu1 %v2899_v17 }
 0x27d   : > { %2603 = vmatmul.mubr.msk.bf16.vlgmr.msra.gmra.mrb[8].mxu1 %vm1091_vm2, %v3220_v22 }
 0x27e   : > { %2618 = vmatprep.mubr.msk.bf16.mxu1 %vm2900_vm1, %v2899_v17  ;;  %2615 = vmatpush3.bf16.msra.mxu1 %v2769_v26  ;;  %v2775_v26 = vld [vmem:[%s3177_s30] sm:$0xff]  }
 0x27f   : > { %2616 = vmatprep.subr.bf16.mxu1 %v2899_v17 }
 0x282   : > { %2617 = vmatpush3.bf16.msra.mxu1 %v2770_v27  ;;  %v2776_v27 = vld [vmem:[%s3177_s30 + $0x8] sm:$0xff]  }
 0x283   : > { %2628 = vmatprep.subr.bf16.mxu1 %v2899_v17 }
 0x285   : > { %2619 = vmatmul.mubr.msk.bf16.vlgmr.msra.gmra.mrb[12].mxu1 %vm1091_vm2, %v3220_v22 }
 0x286   : > { %2630 = vmatprep.mubr.msk.bf16.mxu1 %vm2900_vm1, %v2899_v17 }
 0x348   : > { %v1311_v41 = vpop.f32.mrb[4].mxu1 }
 0x349   : > { %v1312_v42 = vadd.f32 %v3253_v40, %v1311_v41  ;;  %v2590_v43 = vpop.f32.mrb[5].mxu1 }
 0x34a   : > { %v1314_v44 = vpop.f32.mrb[6].mxu1 }
 0x34b   : > { %v2591_v45 = vpop.f32.mrb[7].mxu1  ;;  %v1318_v46 = vsel %vm1317_vm4, %v1312_v42, -inf }
 0x34c   : > { %1319 = vmax.xlane.f32.xlu0 %v1318_v46  ;;  %v2772_v46 = vld [vmem:[%s3555_s21 + $0x8] sm:$0xff]  }
 0x350   : > { %v1439_v4 = vpop.f32.mrb[8].mxu1 }
 0x351   : > { %v2604_v5 = vpop.f32.mrb[9].mxu1  ;;  %v1440_v24 = vadd.f32 %v2457_v18, %v1439_v4  ;;  %v2488_v18 = vld [vmem:[%s3557_s6] ss:$0 sm:$0xff] }
 0x352   : > { %v1442_v6 = vpop.f32.mrb[10].mxu1 }
 0x353   : > { %v2605_v7 = vpop.f32.mrb[11].mxu1  ;;  %v1575_v25 = vpack.c.bf16 %v1440_v24, %v1440_v24 }
 0x358   : > { %v1569_v35 = vpop.f32.mrb[12].mxu1 }
 0x359   : > { %v1570_v36 = vadd.f32 %v2475_v34, %v1569_v35  ;;  %v2620_v37 = vpop.f32.mrb[13].mxu1 }
 0x35a   : > { %v1572_v38 = vpop.f32.mrb[14].mxu1 }
 0x35b   : > { %v1577_v39 = vpack.c.bf16 %v1570_v36, %v1570_v36 }
 0x35d   : > { %v1640_v41 = vsel %vm1333_vm5, %v1577_v39, 0 }
 0x35e   : > { %2629 = vmatpush3.bf16.msra.mxu1 %v1640_v41 }
 0x35f   : > { %2640 = vmatprep.subr.bf16.mxu1 %v2899_v17 }
 0x3d9   : > { %v1320_v47 = vpop.xlane.xlu0 %1319 }
 0x3da   : > { %v1321_v48 = vsub.f32 %v1312_v42, %v1320_v47 }
 0x3dc   : > { %v1322_v49 = vmul.f32 1.442695, %v1321_v48 }
 0x3de   : > { %2779 = vpow2.f32 %v1322_v49 }
 0x3e8   : > { %v2780_v50 = vpop.eup %2779 }
 0x3e9   : > { %v1324_v51 = vsel %vm1317_vm4, %v2780_v50, 0.0 }
 0x3ea   : > { %1325 = vadd.xlane.f32.xlu0 %v1324_v51 }
 0x477   : > { %v1326_v62 = vpop.xlane.xlu0 %1325 }
 0x478   : > { %2781 = vrcp.f32 %v1326_v62 }
 0x482   : > { %v2782_v63 = vpop.eup %2781 }
 0x483   : > { %v1328_v0 = vmul.f32 %v2782_v63, %v2780_v50  ;;  %v2771_v50 = vld [vmem:[%s3555_s21] sm:$0xff]   ;;  %s3560_s21 = sld [smem:[#allocation8_spill]] }
 0x484   : > { %v2487_v63 = vld [vmem:[%s3556_s0] ss:$0 sm:$0xff] }
 0x485   : > { %v1329_v2 = vpack.c.bf16 %v1328_v0, %v1328_v0 }
 0x487   : > { %2595 = vmatmul.mubr.msk.bf16.vlgmr.msra.gmra.mrb[8].mxu0 %vm1317_vm4, %v1329_v2 }
 0x488   : > { %2607 = vmatpush3.bf16.msra.mxu0 %v2765_v1  ;;  %2610 = vmatprep.mubr.msk.bf16.mxu0 %vm2900_vm1, %v2899_v17 }
 0x489   : > { %2608 = vmatprep.subr.bf16.mxu0 %v2899_v17  ;;  %p2502_p1 = scmp.ne.s32.totalorder %s3560_s21, 1 }
 0x48a   : > { %s3561_s0 = sld [smem:[#allocation37_spill]] (!%p2502_p1)  ;;  %vm2902_vm7 = vmmov (!%p2502_p1), 0   ;;  %s3563_s6 = sld [smem:[#allocation39_spill]] (!%p2502_p1)  ;;  %vm2141_vm8 = vcmask (!%p2502_p1), 16384  }
 0x48b   : > { %s3566_s28 = sld [smem:[#allocation40_spill]] (!%p2502_p1) }
 0x48c   : > { %2609 = vmatpush3.bf16.msra.mxu0 %v2766_v3 }
 0x48d   : > { %2622 = vmatprep.subr.bf16.mxu0 %v2899_v17 }
 0x48f   : > { %2611 = vmatmul.mubr.msk.bf16.vlgmr.msra.gmra.mrb[12].mxu0 %vm1091_vm2, %v3220_v22  ;;  %v2621_v22 = vpop.f32.mrb[15].mxu1 }
 0x490   : > { %2624 = vmatprep.mubr.msk.bf16.mxu0 %vm2900_vm1, %v2899_v17  ;;  %s3562_s8 = smov (!%p2502_p1), %s3561_s0  ;;  %s3564_s3 = smov (!%p2502_p1), %s3563_s6 }
 0x55a   : > { %v3280_v8 = vpop.f32.mrb[8].mxu0 }
 0x55b   : > { %v2596_v9 = vpop.f32.mrb[9].mxu0  ;;  %v1377_v52 = vpack.c.bf16 %v3280_v8, %v3280_v8 }
 0x55c   : > { %v1374_v10 = vpop.f32.mrb[10].mxu0 }
 0x55d   : > { %v2597_v11 = vpop.f32.mrb[11].mxu0 }
 0x562   : > { %v1504_v13 = vpop.f32.mrb[12].mxu0 }
 0x563   : > { %v1505_v14 = vadd.f32 %v2466_v12, %v1504_v13  ;;  %v2612_v15 = vpop.f32.mrb[13].mxu0  ;;  %v2773_v12 = vld [vmem:[%s3168_s9] sm:$0xff]   ;;  %v2774_v13 = vld [vmem:[%s3168_s9 + $0x8] sm:$0xff]  }
 0x564   : > { %v1507_v16 = vpop.f32.mrb[14].mxu0 }
 0x565   : > { %v1576_v19 = vpack.c.bf16 %v1505_v14, %v1505_v14  ;;  %v2613_v21 = vpop.f32.mrb[15].mxu0 }
 0x566   : > { %v2489_v21 = vld [vmem:[%s3558_s22] ss:$0 sm:$0xff] }
 0x567   : > { %v1582_v23 = vsel %vm1270_vm3, %v1576_v19, 0 }
 0x568   : > { %2623 = vmatpush3.bf16.xpose.msra.mxu0 %v1582_v23 }
 0x569   : > { %2634 = vmatprep.subr.bf16.mxu0 %v2899_v17 }
 0x56f   : > { %2625 = vmatmul.mubr.msk.bf16.vlgmr.msra.gmra.mrb[16].mxu0 %vm1270_vm3, %v1575_v25 }
 0x570   : > { %2636 = vmatprep.mubr.msk.bf16.mxu0 %vm2900_vm1, %v2899_v17  ;;  %2635 = vmatpush3.bf16.msra.mxu0 %v2772_v46 }
 0x571   : > { %2646 = vmatprep.subr.bf16.mxu0 %v2899_v17 }
 0x642   : > { %v1618_v28 = vpop.f32.mrb[16].mxu0 }
 0x643   : > { %v1619_v29 = vadd.f32 %v3253_v40, %v1618_v28  ;;  %v2626_v30 = vpop.f32.mrb[17].mxu0  ;;  %v2777_v28 = vld [vmem:[%s3177_s30 + $0x10] sm:$0xff]  }
 0x644   : > { %v1621_v31 = vpop.f32.mrb[18].mxu0  ;;  %v2490_v30 = vld [vmem:[%s1012_s10] ss:$0 sm:$0xff]  ;;  %s3565_s10 = sld [smem:[#allocation38_spill]] (!%p2502_p1) }
 0x645   : > { %v2627_v32 = vpop.f32.mrb[19].mxu0  ;;  %v1624_v33 = vsel %vm1317_vm4, %v1619_v29, -inf }
 0x646   : > { %1625 = vmax.xlane.f32.xlu1 %v1624_v33 }
 0x6d3   : > { %v1626_v40 = vpop.xlane.xlu1 %1625 }
 0x6d4   : > { %v1627_v42 = vsub.f32 %v1619_v29, %v1626_v40  ;;  %v2778_v29 = vld [vmem:[%s3177_s30 + $0x18] sm:$0xff]  }
 0x6d6   : > { %v1628_v43 = vmul.f32 1.442695, %v1627_v42 }
 0x6d8   : > { %2783 = vpow2.f32 %v1628_v43 }
 0x6e2   : > { %v2784_v44 = vpop.eup %2783 }
 0x6e3   : > { %v1630_v45 = vsel %vm1317_vm4, %v2784_v44, 0.0 }
 0x6e4   : > { %1631 = vadd.xlane.f32.xlu1 %v1630_v45 }
 0x771   : > { %v1632_v47 = vpop.xlane.xlu1 %1631 }
 0x772   : > { %2785 = vrcp.f32 %v1632_v47 }
 0x77c   : > { %v2786_v48 = vpop.eup %2785 }
 0x77d   : > { %v1634_v49 = vmul.f32 %v2786_v48, %v2784_v44  ;;  %v2494_v44 = vld [vmem:[%s1020_s2] ss:$0 sm:$0xff] }
 0x77f   : > { %v1635_v51 = vpack.c.bf16 %v1634_v49, %v1634_v49 }
 0x781   : > { %2631 = vmatmul.mubr.msk.bf16.vlgmr.msra.gmra.mrb[16].mxu1 %vm1317_vm4, %v1635_v51 }
 0x782   : > { %2641 = vmatpush3.bf16.msra.mxu1 %v2771_v50  ;;  %2642 = vmatprep.mubr.msk.bf16.mxu1 %vm2900_vm1, %v2899_v17 }
 0x783   : > { %2654 = vmatprep.subr.bf16.mxu1 %v2899_v17 }
 0x789   : > { %2643 = vmatmul.mubr.msk.bf16.vlgmr.msra.gmra.mrb[20].mxu1 %vm1270_vm3, %v1377_v52 }
 0x78a   : > { %2662 = vmatprep.mubr.msk.bf16.mxu1 %vm2900_vm1, %v2899_v17  ;;  %2655 = vmatpush3.bf16.msra.mxu1 %v2775_v26 }
 0x78b   : > { %2656 = vmatprep.subr.bf16.mxu1 %v2899_v17 }
 0x78e   : > { %2657 = vmatpush3.bf16.msra.mxu1 %v2776_v27 }
 0x78f   : > { %2658 = vmatprep.subr.bf16.mxu1 %v2899_v17 }
 0x792   : > { %2659 = vmatpush3.bf16.msra.mxu1 %v2777_v28 }
 0x793   : > { %2660 = vmatprep.subr.bf16.mxu1 %v2899_v17 }
 0x796   : > { %2661 = vmatpush3.bf16.msra.mxu1 %v2778_v29 }
 0x854   : > { %v1676_v53 = vpop.f32.mrb[16].mxu1 }
 0x855   : > { %v1682_v54 = vpack.c.bf16 %v1676_v53, %v1676_v53  ;;  %v2632_v55 = vpop.f32.mrb[17].mxu1 }
 0x856   : > { %v1679_v56 = vpop.f32.mrb[18].mxu1 }
 0x857   : > { %v2633_v57 = vpop.f32.mrb[19].mxu1  ;;  %2637 = vmatmul.mubr.msk.bf16.vlgmr.msra.gmra.mrb[20].mxu0 %vm1270_vm3, %v1682_v54 }
 0x858   : > { %2650 = vmatprep.mubr.msk.bf16.mxu0 %vm2900_vm1, %v2899_v17  ;;  %2647 = vmatpush3.bf16.msra.mxu0 %v2773_v12 }
 0x859   : > { %2648 = vmatprep.subr.bf16.mxu0 %v2899_v17 }
 0x85c   : > { %v1778_v58 = vpop.f32.mrb[20].mxu1  ;;  %2649 = vmatpush3.bf16.msra.mxu0 %v2774_v13 }
 0x85d   : > { %v2644_v59 = vpop.f32.mrb[21].mxu1 }
 0x85e   : > { %v1781_v60 = vpop.f32.mrb[22].mxu1 }
 0x85f   : > { %v2645_v61 = vpop.f32.mrb[23].mxu1 }
 0x860   : > { %v2500_v61 = vld [vmem:[%s1023_s20] ss:$0 sm:$0xff] }
 0x92a   : > { %v1729_v62 = vpop.f32.mrb[20].mxu0 }
 0x92b   : > { %v1779_v0 = vadd.f32 %v1778_v58, %v1729_v62  ;;  %v2638_v1 = vpop.f32.mrb[21].mxu0 }
 0x92c   : > { %v1732_v2 = vpop.f32.mrb[22].mxu0 }
 0x92d   : > { %v1791_v3 = vadd.f32 %v2487_v63, %v1779_v0  ;;  %v2639_v4 = vpop.f32.mrb[23].mxu0  ;;  %v2501_v63 = vld [vmem:[%s1026_s1] ss:$0 sm:$0xff] }
 0x92e   : > { %v2793_v2 = vld [vmem:[%s3561_s0] sm:$0xff] (!%p2502_p1)   ;;  %v2794_v4 = vld [vmem:[%s3562_s8 + $0x8] sm:$0xff] (!%p2502_p1)  }
 0x92f   : > { %v1792_v5 = vadd.f32 %v1791_v3, %v3213_v20  ;;  %v2901_v3 = vmov (!%p2502_p1), 0.0  }
 0x930   : > { %2666 = vmatprep.subr.bf16.mxu0 (!%p2502_p1), %v2901_v3  ;;  %2674 = vmatprep.subr.bf16.mxu1 (!%p2502_p1), %v2901_v3 }
 0x931   : > { %v1795_v6 = vsel %vm1091_vm2, %v1792_v5, 0.0 }
 0x932   : > { %1796 = vadd.xlane.f32.xlu0 %v1795_v6  ;;  %v2795_v6 = vld [vmem:[%s3563_s6] sm:$0xff] (!%p2502_p1)  }
 0x9bf   : > { %v1797_v7 = vpop.xlane.xlu0 %1796 }
 0x9c0   : > { %v1799_v8 = vmul.f32 0.03125, %v1797_v7  ;;  %v2796_v7 = vld [vmem:[%s3564_s3 + $0x8] sm:$0xff] (!%p2502_p1)  }
 0x9c2   : > { %v1800_v9 = vsub.f32 %v1792_v5, %v1799_v8  ;;  %v2023_v8 = vld [vmem:[%s3565_s10] sm:$0x1] (!%p2502_p1) }
 0x9c4   : > { %v1801_v10 = vmul.f32 %v1800_v9, %v1800_v9 }
 0x9c6   : > { %v1802_v11 = vsel %vm1091_vm2, %v1801_v10, 0.0 }
 0x9c7   : > { %1803 = vadd.xlane.f32.xlu1 %v1802_v11 }
 0xa54   : > { %v1804_v20 = vpop.xlane.xlu1 %1803 }
 0xa55   : > { %v1805_v14 = vmul.f32 0.03125, %v1804_v20 }
 0xa57   : > { %v1806_v15 = vadd.f32 1e-12, %v1805_v14 }
 0xa59   : > { %2787 = vrsqrt.f32 %v1806_v15  ;;  %v2085_v15 = vld [vmem:[%s3566_s28] sm:$0x1] (!%p2502_p1) }
 0xa63   : > { %v2788_v16 = vpop.eup %2787 }
 0xa64   : > { %v1808_v19 = vmul.f32 %v2788_v16, %v1800_v9 }
 0xa66   : > { %v1815_v23 = vmul.f32 %v2488_v18, %v1808_v19 }
 0xa68   : > { %v1822_v24 = vadd.f32 %v2489_v21, %v1815_v23 }
 0xa6a   : > { %v1823_v25 = vpack.c.bf16 %v1822_v24, %v1822_v24 }
 0xa6c   : > { %2651 = vmatmul.mubr.msk.bf16.vlgmr.msra.gmra.mrb[24].mxu0 %vm1091_vm2, %v1823_v25 }
 0xa6d   : > { %2667 = vmatpush3.bf16.msra.mxu0 (!%p2502_p1), %v2793_v2  ;;  %2670 = vmatprep.mubr.msk.bf16.mxu0 (!%p2502_p1), %vm2902_vm7, %v2901_v3 }
 0xa6e   : > { %2668 = vmatprep.subr.bf16.mxu0 (!%p2502_p1), %v2901_v3 }
 0xa71   : > { %2669 = vmatpush3.bf16.msra.mxu0 (!%p2502_p1), %v2794_v4 }
 0xb3f   : > { %v1884_v31 = vpop.f32.mrb[24].mxu0 }
 0xb40   : > { %v1885_v32 = vadd.f32 %v2490_v30, %v1884_v31  ;;  %v2652_v33 = vpop.f32.mrb[25].mxu0 }
 0xb41   : > { %v1887_v34 = vpop.f32.mrb[26].mxu0 }
 0xb42   : > { %v1890_v35 = vmul.f32 %v1885_v32, %v1885_v32  ;;  %v2653_v36 = vpop.f32.mrb[27].mxu0 }
 0xb44   : > { %v1891_v37 = vmul.f32 %v1890_v35, %v1885_v32 }
 0xb46   : > { %v1892_v38 = vmul.f32 0.044715, %v1891_v37 }
 0xb48   : > { %v1893_v39 = vadd.f32 %v1892_v38, %v1885_v32 }
 0xb4a   : > { %v1894_v22 = vmul.f32 0.7978846, %v1893_v39 }
 0xb4c   : > { %2789 = vtanh.f32 %v1894_v22 }
 0xb56   : > { %v2790_v17 = vpop.eup %2789 }
 0xb57   : > { %v1896_v41 = vadd.f32 1.0, %v2790_v17 }
 0xb59   : > { %v1897_v40 = vmul.f32 0.5, %v1896_v41 }
 0xb5b   : > { %v1898_v42 = vmul.f32 %v1897_v40, %v1885_v32 }
 0xb5d   : > { %v1899_v43 = vpack.c.bf16 %v1898_v42, %v1898_v42 }
 0xb5f   : > { %2663 = vmatmul.mubr.msk.bf16.vlgmr.msra.gmra.mrb[24].mxu1 %vm1939_vm6, %v1899_v43 }
 0xb60   : > { %2678 = vmatprep.mubr.msk.bf16.mxu1 (!%p2502_p1), %vm2902_vm7, %v2901_v3  ;;  %2675 = vmatpush3.bf16.msra.mxu1 (!%p2502_p1), %v2795_v6 }
 0xb61   : > { %2676 = vmatprep.subr.bf16.mxu1 (!%p2502_p1), %v2901_v3 }
 0xb64   : > { %2677 = vmatpush3.bf16.msra.mxu1 (!%p2502_p1), %v2796_v7 }
 0xc32   : > { %v1977_v45 = vpop.f32.mrb[24].mxu1 }
 0xc33   : > { %v1978_v46 = vadd.f32 %v2494_v44, %v1977_v45  ;;  %v2664_v47 = vpop.f32.mrb[25].mxu1 }
 0xc34   : > { %v1980_v48 = vpop.f32.mrb[26].mxu1 }
 0xc35   : > { %v2665_v49 = vpop.f32.mrb[27].mxu1  ;;  %v1983_v50 = vadd.f32 %v1978_v46, %v1822_v24 }
 0xc37   : > { %v1986_v51 = vsel %vm1091_vm2, %v1983_v50, 0.0 }
 0xc38   : > { %1987 = vadd.xlane.f32.xlu0 %v1986_v51 }
 0xcc5   : > { %v1988_v52 = vpop.xlane.xlu0 %1987 }
 0xcc6   : > { %v1989_v53 = vmul.f32 0.03125, %v1988_v52 }
 0xcc8   : > { %v1990_v54 = vsub.f32 %v1983_v50, %v1989_v53 }
 0xcca   : > { %v1991_v55 = vmul.f32 %v1990_v54, %v1990_v54 }
 0xccc   : > { %v1992_v56 = vsel %vm1091_vm2, %v1991_v55, 0.0 }
 0xccd   : > { %1993 = vadd.xlane.f32.xlu1 %v1992_v56 }
 0xd5a   : > { %v1994_v57 = vpop.xlane.xlu1 %1993 }
 0xd5b   : > { %v1995_v58 = vmul.f32 0.03125, %v1994_v57 }
 0xd5d   : > { %v1996_v59 = vadd.f32 1e-12, %v1995_v58 }
 0xd5f   : > { %2791 = vrsqrt.f32 %v1996_v59 }
 0xd69   : > { %v2792_v60 = vpop.eup %2791 }
 0xd6a   : > { %v1998_v62 = vmul.f32 %v2792_v60, %v1990_v54  ;;  %2017 = sbr.rel (%p2502_p1) target bundleno = 4198 (0x1066), region = 124 }
 0xd6c   : > { %v2005_v0 = vmul.f32 %v2500_v61, %v1998_v62 }
 0xd6e   : > { %v2012_v1 = vadd.f32 %v2501_v63, %v2005_v0 }
 0xd70   : > { %2013 = vst.msk [vmem:[#allocation2] sm:$0xff] %vm1091_vm2, %v2012_v1  ;;  %v2018_v5 = vpack.c.bf16 (!%p2502_p1), %v2012_v1, %v2012_v1 }
 0xd72   : > { %2671 = vmatmul.mubr.msk.bf16.vlgmr.msra.gmra.mrb[0].mxu0 %vm1091_vm2, %v2018_v5 }
 0xe45   : > { %v2073_v9 = vpop.f32.mrb[0].mxu0 }
 0xe46   : > { %v2074_v10 = vadd.f32 %v2073_v9, %v2023_v8  ;;  %v2672_v11 = vpop.f32.mrb[1].mxu0 }
 0xe47   : > { %v2076_v12 = vpop.f32.mrb[2].mxu0 }
 0xe48   : > { %2797 = vtanh.f32 %v2074_v10  ;;  %v2673_v13 = vpop.f32.mrb[3].mxu0 }
 0xe52   : > { %v2798_v20 = vpop.eup %2797 }
 0xe53   : > { %v2080_v14 = vpack.c.bf16 %v2798_v20, %v2798_v20 }
 0xe55   : > { %2679 = vmatmul.mubr.msk.bf16.vlgmr.msra.gmra.mrb[0].mxu1 %vm1091_vm2, %v2080_v14 }
 0xf28   : > { %v2135_v16 = vpop.f32.mrb[0].mxu1 }
 0xf29   : > { %v2136_v18 = vadd.f32 %v2135_v16, %v2085_v15  ;;  %v2680_v19 = vpop.f32.mrb[1].mxu1 }
 0xf2a   : > { %v2138_v21 = vpop.f32.mrb[2].mxu1 }
 0xf2b   : > { %v2681_v23 = vpop.f32.mrb[3].mxu1  ;;  %v2142_v24 = vsel %vm2141_vm8, %v2136_v18, -inf }
 0xf2c   : > { %2143 = vmax.xlane.f32.xlu0 %v2142_v24 }
 0xfb9   : > { %v2144_v25 = vpop.xlane.xlu0 %2143 }
 0xfba   : > { %v2145_v26 = vsub.f32 %v2136_v18, %v2144_v25 }
 0xfbc   : > { %v2146_v27 = vmul.f32 1.442695, %v2145_v26 }
 0xfbe   : > { %2799 = vpow2.f32 %v2146_v27 }
 0xfc8   : > { %v2800_v28 = vpop.eup %2799 }
 0xfc9   : > { %v2148_v29 = vsel %vm2141_vm8, %v2800_v28, 0.0 }
 0xfca   : > { %2149 = vadd.xlane.f32.xlu0 %v2148_v29 }
0x1057   : > { %v2150_v30 = vpop.xlane.xlu0 %2149 }
0x1058   : > { %2801 = vrcp.f32 %v2150_v30 }
0x1062   : > { %v2802_v31 = vpop.eup %2801 }
0x1063   : > { %v2152_v32 = vmul.f32 %v2802_v31, %v2800_v28 }
0x1065   : > { %2153 = vst.msk [vmem:[%s3193_s29] sm:$0x1] %vm2141_vm8, %v2152_v32 }
0x1066 PF: > { %s3567_s7 = sld [smem:[#allocation9_spill]]  ;;  %s3569_s27 = sld [smem:[#allocation41_spill]] }
0x1067   : > { %s2167_s5 = sshll.u32 %s3193_s29, 4  ;;  %s3571_s4 = sand.u32 1, %s2873_s26   ;;  %s2168_s5 = int_to_ptr.vmem [resolvable:$true] %s2167_s5 }
0x1068   : > { %s2155_s1 = scalar_lea.sflag [#allocation4], %s3571_s4  ;;  %s2803_s6 = scalar_lea.vmem %s2168_s5, 16 }
0x1069   : > { %p2804_p2 = scmp.ne.s32.totalorder %s2168_s5, %s2803_s6  ;;  %s2903_s23 = smov [#allocation3]  }
0x106a   : > { %s2807_s22 = sshll.u32 %s2903_s23, 4  ;;  %s2808_s22 = int_to_ptr.vmem [resolvable:$false] %s2807_s22 }
0x106b   : > { %p2805_p4 = pnand %p2804_p2, %p3078_p3  ;;  %s2809_s9 = scalar_lea.vmem %s2808_s22, 32 }
0x106c   : > { %s2509_s24 = sshll.u32 %s3567_s7, 4  ;;  %s3570_s20 = smov %s3569_s27 }
0x106d   : > { %s3399_s0 = scalar_lea.hbm %s3569_s27, %s2509_s24  ;;  %p2806_p5 = pneg %p2805_p4 }
0x106e   : > { %p2810_p6 = scmp.lt.s32.totalorder %s2168_s5, %s2808_s22  ;;  %p2811_p7 = scmp.lt.s32.totalorder %s2809_s9, %s2803_s6 }
0x1070   : > { %p2812_p8 = por %p2811_p7, %p2810_p6 }
0x1072   : > { %p2813_p10 = pnand %p2812_p8, %p2806_p5 }
0x1074   : > { %2816 = shalt.err (!%p2813_p10)
}
0x1075   : > { %s2817_s29 = scalar_lea.hbm %s3399_s0, 16  ;;  %s2821_s30 = scalar_lea.hbm %s3570_s20, 32 }
0x1076   : > { %p2818_p11 = scmp.ne.s32.totalorder %s3399_s0, %s2817_s29  ;;  %p2822_p0 = scmp.lt.u32.totalorder %s3399_s0, %s3570_s20 }
0x1077   : > { %p2823_p1 = scmp.lt.u32.totalorder %s2821_s30, %s2817_s29  ;;  %p2825_p4 = scmp.lt.u32.totalorder %s2817_s29, %s3399_s0 }
0x1078   : > { %p2819_p12 = pnand %p2818_p11, %p3078_p3 }
0x1079   : > { %p2824_p2 = por %p2823_p1, %p2822_p0 }
0x107a   : > { %p2820_p13 = pneg %p2819_p12 }
0x107b   : > { %p2826_p5 = por %p2825_p4, %p2824_p2 }
0x107d   : > { %p2827_p6 = pnand %p2826_p5, %p2820_p13 }
0x107f   : > { %2830 = shalt.err (!%p2827_p6)
}
0x1080   : > { %2682 = dma.vmem_to_hbm [thread:$0]  (%p3078_p3), %s2168_s5, 16, %s3399_s0, %s2155_s1  }
0x1081 PF: > { %s3572_s7 = sld [smem:[#allocation12_spill]]  ;;  %s3573_s24 = sld [smem:[#allocation6_spill]] }
0x1087   : > { %p2688_p7 = scmp.ge.s32.totalorder %s3572_s7, 2  ;;  %s2179_s19 = sand.u32 1, %s3573_s24  }
0x1088   : > { %s2180_s27 = scalar_lea.sflag [#allocation4], %s2179_s19 }
0x1089   : > { %p2685_p8 = pnand %p2688_p7, %p3088_p9 }
0x108b   : > { %2864 = dma.done.wait (!%p2685_p8), %s2180_s27, 16  }
0x108c   : > { %2866 = vsyncadd (!%p2685_p8), %s2180_s27, 4294967280  ;;  %s37_s0 = sadd.s32 1, %s3572_s7   ;;  %s3575_s4 = sld [smem:[#allocation7_spill]] }
0x108d   : > { %p34_p10 = scmp.ge.s32.totalorder %s37_s0, 6   ;;  %s3576_s27 = sld [smem:[#allocation17_spill]] }
0x108e   : > { %s3577_s28 = sld [smem:[#allocation10_spill]]  ;;  %s3578_s6 = sld [smem:[#allocation11_spill]] }
0x108f   : > { %s3579_s2 = sld [smem:[#allocation13_spill]]  ;;  %s3580_s29 = sld [smem:[#allocation15_spill]] }
0x1090   : > { %s3581_s5 = smov %s2873_s26  ;;  %36 = sbr.rel (!%p34_p10) target bundleno = 24 (0x18), region = 217 }
0x1092   : > { %s3582_s26 = smov %s3575_s4 }
0x1097   :  { %2184 = vsyncpa [#allocation4], 1 }
0x1098   :  { %2186 = vsyncpa [#allocation4 + $0x1], 1 }

</bundles_post_ra>
